<compile_context>
chip_gen: v7x
topology: tpu7x:2x2x1
jax: 0.10.0
libtpu: 0.0.40
codegen_flags: <defaults>
</compile_context>

<pallas_src>
import functools

import jax
import jax.numpy as jnp
from jax.experimental import pallas as pl
from jax.experimental.pallas import tpu as pltpu


# ------------------------------ small helpers ------------------------------ #

def _round_up(x, m):
    return (x + m - 1) // m * m


def _pick_tile(dim, cap, mult):
    """Largest tile <= cap that is a multiple of `mult` and divides the padded dim."""
    dim_r = _round_up(dim, mult)
    t = min(cap, dim_r)
    t = (t // mult) * mult
    while dim_r % t:
        t -= mult
    return t, dim_r


# ------------------------- tiled fused matmul kernel ------------------------ #

def _matmul_bias_act_kernel(*refs, act, has_residual):
    if has_residual:
        a_ref, w_ref, b_ref, r_ref, o_ref, acc_ref = refs
    else:
        a_ref, w_ref, b_ref, o_ref, acc_ref = refs
        r_ref = None

    @pl.when(pl.program_id(2) == 0)
    def _init():
        acc_ref[...] = jnp.zeros_like(acc_ref)

    acc_ref[...] += jnp.dot(a_ref[...], w_ref[...],
                            preferred_element_type=jnp.float32)

    @pl.when(pl.program_id(2) == pl.num_programs(2) - 1)
    def _finalize():
        out = acc_ref[...] + b_ref[...]           # f32 epilogue (v5e-safe)
        if act == "gelu":
            out = jax.nn.gelu(out, approximate=True)
        if has_residual:
            out = out + r_ref[...]
        o_ref[...] = out.astype(o_ref.dtype)


def matmul_bias_act(a, w, bias, residual=None, act=None):
    """(M,K) @ (K,N) + bias [+ GELU] [+ residual]; bf16 MXU inputs, f32 out."""
    M, K = a.shape
    K2, N = w.shape
    assert K == K2

    tm, Mp = _pick_tile(M, 256, 8)
    tn, Np = _pick_tile(N, 256, 128)
    tk, Kp = _pick_tile(K, 512, 128)

    a_p = jnp.pad(a, ((0, Mp - M), (0, Kp - K))).astype(jnp.bfloat16)
    w_p = jnp.pad(w, ((0, Kp - K), (0, Np - N))).astype(jnp.bfloat16)
    b_p = jnp.pad(bias.reshape(1, N).astype(jnp.float32),
                  ((0, 0), (0, Np - N)))

    in_specs = [
        pl.BlockSpec((tm, tk), lambda i, j, k: (i, k)),
        pl.BlockSpec((tk, tn), lambda i, j, k: (k, j)),
        pl.BlockSpec((1, tn), lambda i, j, k: (0, j)),
    ]
    operands = [a_p, w_p, b_p]
    if residual is not None:
        r_p = jnp.pad(residual.astype(jnp.float32),
                      ((0, Mp - M), (0, Np - N)))
        in_specs.append(pl.BlockSpec((tm, tn), lambda i, j, k: (i, j)))
        operands.append(r_p)

    kern = functools.partial(_matmul_bias_act_kernel, act=act,
                             has_residual=residual is not None)
    out = pl.pallas_call(
        kern,
        out_shape=jax.ShapeDtypeStruct((Mp, Np), jnp.float32),
        grid_spec=pltpu.PrefetchScalarGridSpec(
            num_scalar_prefetch=0,
            grid=(Mp // tm, Np // tn, Kp // tk),
            in_specs=in_specs,
            out_specs=pl.BlockSpec((tm, tn), lambda i, j, k: (i, j)),
            scratch_shapes=[pltpu.VMEM((tm, tn), jnp.float32)],
        ),
        compiler_params=pltpu.CompilerParams(
            dimension_semantics=("parallel", "parallel", "arbitrary")),
        cost_estimate=pl.CostEstimate(
            flops=int(2 * Mp * Np * Kp),
            transcendentals=int(Mp * Np) if act == "gelu" else 0,
            bytes_accessed=int(2 * (Mp * Kp + Kp * Np) + 4 * Mp * Np
                               + (4 * Mp * Np if residual is not None else 0)
                               + 4 * Np)),
    )(*operands)
    return out[:M, :N]


# ------------------------------- LayerNorm ---------------------------------- #

def _layernorm_kernel(x_ref, g_ref, b_ref, o_ref, *, eps):
    x = x_ref[...].astype(jnp.float32)
    mu = jnp.mean(x, axis=-1, keepdims=True)
    xc = x - mu
    var = jnp.mean(xc * xc, axis=-1, keepdims=True)
    inv = jax.lax.rsqrt(var + eps)
    o_ref[...] = (xc * inv * g_ref[...] + b_ref[...]).astype(o_ref.dtype)


def layer_norm(x2d, gamma, beta, eps=1e-6):
    R, D = x2d.shape
    tr, Rp = _pick_tile(R, 512, 8)
    x_p = jnp.pad(x2d.astype(jnp.float32), ((0, Rp - R), (0, 0)))
    out = pl.pallas_call(
        functools.partial(_layernorm_kernel, eps=eps),
        out_shape=jax.ShapeDtypeStruct((Rp, D), jnp.float32),
        grid=(Rp // tr,),
        in_specs=[pl.BlockSpec((tr, D), lambda i: (i, 0)),
                  pl.BlockSpec((1, D), lambda i: (0, 0)),
                  pl.BlockSpec((1, D), lambda i: (0, 0))],
        out_specs=pl.BlockSpec((tr, D), lambda i: (i, 0)),
        compiler_params=pltpu.CompilerParams(dimension_semantics=("parallel",)),
    )(x_p, gamma.reshape(1, D), beta.reshape(1, D))
    return out[:R]


# ---------------------- attention (per batch-head softmax) ------------------ #

def _attention_kernel(q_ref, k_ref, v_ref, o_ref, *, scale):
    q = q_ref[0].astype(jnp.float32)      # (S, Dh)
    k = k_ref[0].astype(jnp.float32)      # (S, Dh)
    v = v_ref[0]                          # (S, Dh) bf16
    s = jax.lax.dot_general(q, k, (((1,), (1,)), ((), ())),
                            preferred_element_type=jnp.float32) * scale
    m = jnp.max(s, axis=-1, keepdims=True)
    p = jnp.exp(s - m)
    l = jnp.sum(p, axis=-1, keepdims=True)
    o = jnp.dot(p.astype(v.dtype), v, preferred_element_type=jnp.float32) / l
    o_ref[0] = o.astype(o_ref.dtype)


def multihead_attention(q, k, v, scale):
    """q/k/v: (B*H, S, Dh) bf16 -> (B*H, S, Dh) f32."""
    BH, S, Dh = q.shape
    return pl.pallas_call(
        functools.partial(_attention_kernel, scale=scale),
        out_shape=jax.ShapeDtypeStruct((BH, S, Dh), jnp.float32),
        grid=(BH,),
        in_specs=[pl.BlockSpec((1, S, Dh), lambda i: (i, 0, 0))] * 3,
        out_specs=pl.BlockSpec((1, S, Dh), lambda i: (i, 0, 0)),
        compiler_params=pltpu.CompilerParams(dimension_semantics=("parallel",)),
    )(q, k, v)


# ------------------- fused token mean-pool + fc_norm LayerNorm -------------- #

def _pool_norm_kernel(x_ref, g_ref, b_ref, o_ref, *, eps):
    x = x_ref[0].astype(jnp.float32)                 # (T, D)
    pooled = jnp.mean(x, axis=0, keepdims=True)      # (1, D) mean over tokens
    mu = jnp.mean(pooled, axis=-1, keepdims=True)
    xc = pooled - mu
    var = jnp.mean(xc * xc, axis=-1, keepdims=True)
    inv = jax.lax.rsqrt(var + eps)
    o_ref[0] = (xc * inv * g_ref[...] + b_ref[...]).astype(o_ref.dtype)


def pooled_layer_norm(x, gamma, beta, eps=1e-6):
    """(B, T, D) -> (B, D): mean over tokens then LayerNorm, one kernel."""
    B, T, D = x.shape
    out = pl.pallas_call(
        functools.partial(_pool_norm_kernel, eps=eps),
        out_shape=jax.ShapeDtypeStruct((B, 1, D), jnp.float32),
        grid=(B,),
        in_specs=[pl.BlockSpec((1, T, D), lambda b: (b, 0, 0)),
                  pl.BlockSpec((1, D), lambda b: (0, 0)),
                  pl.BlockSpec((1, D), lambda b: (0, 0))],
        out_specs=pl.BlockSpec((1, 1, D), lambda b: (b, 0, 0)),
        compiler_params=pltpu.CompilerParams(dimension_semantics=("parallel",)),
    )(x.astype(jnp.float32), gamma.reshape(1, D), beta.reshape(1, D))
    return out.reshape(B, D)


# ------------------------------- patch embed -------------------------------- #

def patch_embed(x_nhwc, w_conv, b_conv, patch, pos_patch):
    """Non-overlapping PxP conv == reshape + matmul; pos-embed add fused into
    the matmul epilogue (residual path). pos_patch: (num_patches, D)."""
    N, H, W, C = x_nhwc.shape
    gh, gw = H // patch, W // patch
    P = gh * gw
    x = x_nhwc.reshape(N, gh, patch, gw, patch, C)
    x = jnp.transpose(x, (0, 1, 3, 2, 4, 5)).reshape(N * P, patch * patch * C)
    D = w_conv.shape[0]
    wmat = jnp.transpose(w_conv, (2, 3, 1, 0)).reshape(patch * patch * C, D)
    pos_rows = jnp.broadcast_to(pos_patch[None, :, :], (N, P, D)).reshape(N * P, D)
    out = matmul_bias_act(x, wmat, b_conv, residual=pos_rows)
    return out.reshape(N, P, D)


# --------------------------- parameter construction ------------------------- #

def build_vit_params(key, *, img_size=32, patch=8, in_chans=3, embed_dim=128,
                     depth=2, num_heads=4, mlp_ratio=4):
    num_patches = (img_size // patch) ** 2
    seq = num_patches + 1
    hidden = embed_dim * mlp_ratio
    keys = iter(jax.random.split(key, 8 + depth * 8))

    def nrm(k, shape, std):
        return std * jax.random.normal(k, shape, jnp.float32)

    params = {
        "cfg": dict(patch=patch, heads=num_heads, embed_dim=embed_dim),
        "patch_w": nrm(next(keys), (embed_dim, in_chans, patch, patch),
                       (2.0 / (in_chans * patch * patch)) ** 0.5),
        "patch_b": jnp.zeros((embed_dim,), jnp.float32),
        "cls_token": nrm(next(keys), (1, 1, embed_dim), 0.02),
        "pos_embed": nrm(next(keys), (1, seq, embed_dim), 0.02),
        "fc_norm_g": jnp.ones((embed_dim,), jnp.float32),
        "fc_norm_b": jnp.zeros((embed_dim,), jnp.float32),
        "blocks": [],
    }
    for _ in range(depth):
        blk = {
            "ln1_g": jnp.ones((embed_dim,), jnp.float32),
            "ln1_b": jnp.zeros((embed_dim,), jnp.float32),
            "qkv_w": nrm(next(keys), (embed_dim, 3 * embed_dim),
                         embed_dim ** -0.5),
            "qkv_b": jnp.zeros((3 * embed_dim,), jnp.float32),
            "proj_w": nrm(next(keys), (embed_dim, embed_dim), embed_dim ** -0.5),
            "proj_b": jnp.zeros((embed_dim,), jnp.float32),
            "ln2_g": jnp.ones((embed_dim,), jnp.float32),
            "ln2_b": jnp.zeros((embed_dim,), jnp.float32),
            "fc1_w": nrm(next(keys), (embed_dim, hidden), embed_dim ** -0.5),
            "fc1_b": jnp.zeros((hidden,), jnp.float32),
            "fc2_w": nrm(next(keys), (hidden, embed_dim), hidden ** -0.5),
            "fc2_b": jnp.zeros((embed_dim,), jnp.float32),
        }
        params["blocks"].append(blk)
    return params


# --------------------------------- forward ---------------------------------- #

def image_encoder_forward(params, x_nchw):
    """ViT trunk, avg pool over patch tokens. x: (N, 3, H, W) -> (N, embed_dim)."""
    cfg = params["cfg"]
    patch, H_heads = cfg["patch"], cfg["heads"]

    x = jnp.transpose(x_nchw, (0, 2, 3, 1)).astype(jnp.float32)  # NCHW -> NHWC

    # patch embed with pos-embed for patch tokens fused into the matmul epilogue
    pos_patch = params["pos_embed"][0, 1:, :]                    # (P, D)
    tokens = patch_embed(x, params["patch_w"], params["patch_b"], patch,
                         pos_patch)                              # (B, P, D)
    B, num_patches, D = tokens.shape
    Dh = D // H_heads
    scale = Dh ** -0.5

    # cls token + its pos-embed is a parameter-only constant under jit
    cls = jnp.broadcast_to(params["cls_token"] + params["pos_embed"][:, :1, :],
                           (B, 1, D))
    tok = jnp.concatenate([cls, tokens], axis=1)                 # (B, S, D)
    S = tok.shape[1]

    for blk in params["blocks"]:
        # ---- multi-head self-attention, residual fused into proj matmul ----
        x2 = tok.reshape(B * S, D)
        xn = layer_norm(x2, blk["ln1_g"], blk["ln1_b"])
        qkv = matmul_bias_act(xn, blk["qkv_w"], blk["qkv_b"])    # (B*S, 3D)
        qkv = jnp.transpose(qkv.reshape(B, S, 3, H_heads, Dh), (2, 0, 3, 1, 4))
        q = qkv[0].reshape(B * H_heads, S, Dh).astype(jnp.bfloat16)
        k = qkv[1].reshape(B * H_heads, S, Dh).astype(jnp.bfloat16)
        v = qkv[2].reshape(B * H_heads, S, Dh).astype(jnp.bfloat16)
        attn = multihead_attention(q, k, v, scale)               # (B*H, S, Dh)
        attn = jnp.transpose(attn.reshape(B, H_heads, S, Dh),
                             (0, 2, 1, 3)).reshape(B * S, D)
        tok = matmul_bias_act(attn, blk["proj_w"], blk["proj_b"],
                              residual=x2).reshape(B, S, D)

        # ---- MLP (GELU fused into fc1, residual fused into fc2) ----
        x2 = tok.reshape(B * S, D)
        xn = layer_norm(x2, blk["ln2_g"], blk["ln2_b"])
        h = matmul_bias_act(xn, blk["fc1_w"], blk["fc1_b"], act="gelu")
        tok = matmul_bias_act(h, blk["fc2_w"], blk["fc2_b"],
                              residual=x2).reshape(B, S, D)

    # global_pool='avg': mean over patch tokens (exclude cls) fused with fc_norm.
    return pooled_layer_norm(tok[:, 1:, :], params["fc_norm_g"],
                             params["fc_norm_b"])


if __name__ == "__main__":
    key = jax.random.PRNGKey(0)
    kparams, kx = jax.random.split(key)

    params = build_vit_params(kparams, img_size=32, patch=8, embed_dim=128,
                              depth=2, num_heads=4, mlp_ratio=4)
    x = jax.random.normal(kx, (2, 3, 32, 32), jnp.float32)   # PyTorch NCHW

    fwd = jax.jit(lambda inp: image_encoder_forward(params, inp))
    out = jax.block_until_ready(fwd(x))

    assert out.shape == (2, 128), out.shape
    assert bool(jnp.all(jnp.isfinite(out)))
    print("KERNEL_OK")
</pallas_src>

<mosaic_0001>
module attributes {stable_mosaic.version = 11 : i64} {
  func.func @_matmul_bias_act_kernel(%arg0: i32, %arg1: i32, %arg2: i32, %arg3: memref<32x256xbf16, #tpu.memory_space<vmem>>, %arg4: memref<256x128xbf16, #tpu.memory_space<vmem>>, %arg5: memref<1x128xf32, #tpu.memory_space<vmem>>, %arg6: memref<32x128xf32, #tpu.memory_space<vmem>>, %arg7: memref<32x128xf32, #tpu.memory_space<vmem>>, %arg8: memref<32x128xf32, #tpu.memory_space<vmem>>) attributes {dimension_semantics = [#tpu.dimension_semantics<parallel>, #tpu.dimension_semantics<parallel>, #tpu.dimension_semantics<arbitrary>], iteration_bounds = array<i64: 1, 1, 1>, scalar_prefetch = 0 : i64, scratch_operands = 1 : i64, tpu.core_type = #tpu.core_type<tc>, window_params = [{transform_indices = @transform_0, window_bounds = array<i64: 32, 256>}, {transform_indices = @transform_1, window_bounds = array<i64: 256, 128>}, {transform_indices = @transform_2, window_bounds = array<i64: 1, 128>}, {transform_indices = @transform_3, window_bounds = array<i64: 32, 128>}, {transform_indices = @transform_4, window_bounds = array<i64: 32, 128>}]} {
    %c0_i32 = arith.constant 0 : i32
    %0 = arith.cmpi eq, %arg2, %c0_i32 : i32
    %1 = arith.extui %0 : i1 to i32
    %c0_i32_0 = arith.constant 0 : i32
    %2 = arith.cmpi ne, %1, %c0_i32_0 : i32
    scf.if %2 {
      %cst_10 = arith.constant 0.000000e+00 : f32
      %12 = vector.broadcast %cst_10 : f32 to vector<32x128xf32>
      %c0_11 = arith.constant 0 : index
      %c0_12 = arith.constant 0 : index
      %13 = vector.load %arg8[%c0_11, %c0_12] : memref<32x128xf32, #tpu.memory_space<vmem>>, vector<32x128xf32>
      tpu.vector_store %arg8[%c0_11, %c0_12], %12 {strides = array<i32>} : memref<32x128xf32, #tpu.memory_space<vmem>>, vector<32x128xf32>,
    } else {
    }
    %c0 = arith.constant 0 : index
    %c0_1 = arith.constant 0 : index
    %3 = vector.load %arg8[%c0, %c0_1] : memref<32x128xf32, #tpu.memory_space<vmem>>, vector<32x128xf32>
    %c0_2 = arith.constant 0 : index
    %c0_3 = arith.constant 0 : index
    %4 = vector.load %arg3[%c0_2, %c0_3] : memref<32x256xbf16, #tpu.memory_space<vmem>>, vector<32x256xbf16>
    %c0_4 = arith.constant 0 : index
    %c0_5 = arith.constant 0 : index
    %5 = vector.load %arg4[%c0_4, %c0_5] : memref<256x128xbf16, #tpu.memory_space<vmem>>, vector<256x128xbf16>
    %cst = arith.constant dense<0.000000e+00> : vector<32x128xf32>
    %6 = tpu.matmul %4, %5, %cst {dimension_numbers = #tpu.dot_dimension_numbers<[1], [0], [0], [1], [0, 0, 1, 1], [], []>} : vector<32x256xbf16>, vector<256x128xbf16>, vector<32x128xf32> -> vector<32x128xf32>
    %7 = arith.addf %3, %6 : vector<32x128xf32>
    %c0_6 = arith.constant 0 : index
    %c0_7 = arith.constant 0 : index
    %8 = vector.load %arg8[%c0_6, %c0_7] : memref<32x128xf32, #tpu.memory_space<vmem>>, vector<32x128xf32>
    tpu.vector_store %arg8[%c0_6, %c0_7], %7 {strides = array<i32>} : memref<32x128xf32, #tpu.memory_space<vmem>>, vector<32x128xf32>,
    %c0_i32_8 = arith.constant 0 : i32
    %9 = arith.cmpi eq, %arg2, %c0_i32_8 : i32
    %10 = arith.extui %9 : i1 to i32
    %c0_i32_9 = arith.constant 0 : i32
    %11 = arith.cmpi ne, %10, %c0_i32_9 : i32
    scf.if %11 {
      %c0_10 = arith.constant 0 : index
      %c0_11 = arith.constant 0 : index
      %12 = vector.load %arg8[%c0_10, %c0_11] : memref<32x128xf32, #tpu.memory_space<vmem>>, vector<32x128xf32>
      %c0_12 = arith.constant 0 : index
      %c0_13 = arith.constant 0 : index
      %13 = vector.load %arg5[%c0_12, %c0_13] : memref<1x128xf32, #tpu.memory_space<vmem>>, vector<1x128xf32>
      %14 = vector.broadcast %13 : vector<1x128xf32> to vector<32x128xf32>
      %15 = arith.addf %12, %14 : vector<32x128xf32>
      %c0_14 = arith.constant 0 : index
      %c0_15 = arith.constant 0 : index
      %16 = vector.load %arg6[%c0_14, %c0_15] : memref<32x128xf32, #tpu.memory_space<vmem>>, vector<32x128xf32>
      %17 = arith.addf %15, %16 : vector<32x128xf32>
      %c0_16 = arith.constant 0 : index
      %c0_17 = arith.constant 0 : index
      %18 = vector.load %arg7[%c0_16, %c0_17] : memref<32x128xf32, #tpu.memory_space<vmem>>, vector<32x128xf32>
      tpu.vector_store %arg7[%c0_16, %c0_17], %17 {strides = array<i32>} : memref<32x128xf32, #tpu.memory_space<vmem>>, vector<32x128xf32>,
    } else {
    }
    return
  }
  func.func @transform_0(%arg0: i32, %arg1: i32, %arg2: i32) -> (i32, i32) {
    %c0_i32 = arith.constant 0 : i32
    return %arg0, %arg2 : i32, i32
  }
  func.func @transform_1(%arg0: i32, %arg1: i32, %arg2: i32) -> (i32, i32) {
    %c0_i32 = arith.constant 0 : i32
    return %arg2, %arg1 : i32, i32
  }
  func.func @transform_2(%arg0: i32, %arg1: i32, %arg2: i32) -> (i32, i32) {
    %c0_i32 = arith.constant 0 : i32
    %c0_i32_0 = arith.constant 0 : i32
    return %c0_i32, %arg1 : i32, i32
  }
  func.func @transform_3(%arg0: i32, %arg1: i32, %arg2: i32) -> (i32, i32) {
    %c0_i32 = arith.constant 0 : i32
    return %arg0, %arg1 : i32, i32
  }
  func.func @transform_4(%arg0: i32, %arg1: i32, %arg2: i32) -> (i32, i32) {
    %c0_i32 = arith.constant 0 : i32
    return %arg0, %arg1 : i32, i32
  }
}

module attributes {stable_mosaic.version = 11 : i64} {
  func.func @_layernorm_kernel(%arg0: i32, %arg1: memref<40x128xf32, #tpu.memory_space<vmem>>, %arg2: memref<1x128xf32, #tpu.memory_space<vmem>>, %arg3: memref<1x128xf32, #tpu.memory_space<vmem>>, %arg4: memref<40x128xf32, #tpu.memory_space<vmem>>) attributes {dimension_semantics = [#tpu.dimension_semantics<parallel>], iteration_bounds = array<i64: 1>, scalar_prefetch = 0 : i64, scratch_operands = 0 : i64, tpu.core_type = #tpu.core_type<tc>, window_params = [{transform_indices = @transform_0, window_bounds = array<i64: 40, 128>}, {pipeline_mode = #tpu.pipeline_mode<synchronous>, transform_indices = @transform_1, window_bounds = array<i64: 1, 128>}, {pipeline_mode = #tpu.pipeline_mode<synchronous>, transform_indices = @transform_2, window_bounds = array<i64: 1, 128>}, {transform_indices = @transform_3, window_bounds = array<i64: 40, 128>}]} {
    %c0 = arith.constant 0 : index
    %c0_0 = arith.constant 0 : index
    %0 = vector.load %arg1[%c0, %c0_0] : memref<40x128xf32, #tpu.memory_space<vmem>>, vector<40x128xf32>
    %cst = arith.constant dense<0.000000e+00> : vector<40xf32>
    %1 = vector.multi_reduction <add>, %0, %cst [1] : vector<40x128xf32> to vector<40xf32>
    %2 = vector.shape_cast %1 : vector<40xf32> to vector<40x1xf32>
    %cst_1 = arith.constant 1.280000e+02 : f32
    %3 = vector.broadcast %cst_1 : f32 to vector<40x1xf32>
    %4 = arith.divf %2, %3 : vector<40x1xf32>
    %5 = vector.broadcast %4 : vector<40x1xf32> to vector<40x128xf32>
    %6 = arith.subf %0, %5 : vector<40x128xf32>
    %7 = arith.mulf %6, %6 : vector<40x128xf32>
    %cst_2 = arith.constant dense<0.000000e+00> : vector<40xf32>
    %8 = vector.multi_reduction <add>, %7, %cst_2 [1] : vector<40x128xf32> to vector<40xf32>
    %9 = vector.shape_cast %8 : vector<40xf32> to vector<40x1xf32>
    %cst_3 = arith.constant 1.280000e+02 : f32
    %10 = vector.broadcast %cst_3 : f32 to vector<40x1xf32>
    %11 = arith.divf %9, %10 : vector<40x1xf32>
    %cst_4 = arith.constant 9.99999997E-7 : f32
    %12 = vector.broadcast %cst_4 : f32 to vector<40x1xf32>
    %13 = arith.addf %11, %12 : vector<40x1xf32>
    %14 = math.rsqrt %13 : vector<40x1xf32>
    %15 = vector.broadcast %14 : vector<40x1xf32> to vector<40x128xf32>
    %16 = arith.mulf %6, %15 : vector<40x128xf32>
    %c0_5 = arith.constant 0 : index
    %c0_6 = arith.constant 0 : index
    %17 = vector.load %arg2[%c0_5, %c0_6] : memref<1x128xf32, #tpu.memory_space<vmem>>, vector<1x128xf32>
    %18 = vector.broadcast %17 : vector<1x128xf32> to vector<40x128xf32>
    %19 = arith.mulf %16, %18 : vector<40x128xf32>
    %c0_7 = arith.constant 0 : index
    %c0_8 = arith.constant 0 : index
    %20 = vector.load %arg3[%c0_7, %c0_8] : memref<1x128xf32, #tpu.memory_space<vmem>>, vector<1x128xf32>
    %21 = vector.broadcast %20 : vector<1x128xf32> to vector<40x128xf32>
    %22 = arith.addf %19, %21 : vector<40x128xf32>
    %c0_9 = arith.constant 0 : index
    %c0_10 = arith.constant 0 : index
    %23 = vector.load %arg4[%c0_9, %c0_10] : memref<40x128xf32, #tpu.memory_space<vmem>>, vector<40x128xf32>
    tpu.vector_store %arg4[%c0_9, %c0_10], %22 {strides = array<i32>} : memref<40x128xf32, #tpu.memory_space<vmem>>, vector<40x128xf32>,
    return
  }
  func.func @transform_0(%arg0: i32) -> (i32, i32) {
    %c0_i32 = arith.constant 0 : i32
    %c0_i32_0 = arith.constant 0 : i32
    return %arg0, %c0_i32 : i32, i32
  }
  func.func @transform_1(%arg0: i32) -> (i32, i32) {
    %c0_i32 = arith.constant 0 : i32
    %c0_i32_0 = arith.constant 0 : i32
    %c0_i32_1 = arith.constant 0 : i32
    return %c0_i32, %c0_i32_0 : i32, i32
  }
  func.func @transform_2(%arg0: i32) -> (i32, i32) {
    %c0_i32 = arith.constant 0 : i32
    %c0_i32_0 = arith.constant 0 : i32
    %c0_i32_1 = arith.constant 0 : i32
    return %c0_i32, %c0_i32_0 : i32, i32
  }
  func.func @transform_3(%arg0: i32) -> (i32, i32) {
    %c0_i32 = arith.constant 0 : i32
    %c0_i32_0 = arith.constant 0 : i32
    return %arg0, %c0_i32 : i32, i32
  }
}

module attributes {stable_mosaic.version = 11 : i64} {
  func.func @_matmul_bias_act_kernel(%arg0: i32, %arg1: i32, %arg2: i32, %arg3: memref<40x128xbf16, #tpu.memory_space<vmem>>, %arg4: memref<128x128xbf16, #tpu.memory_space<vmem>>, %arg5: memref<1x128xf32, #tpu.memory_space<vmem>>, %arg6: memref<40x128xf32, #tpu.memory_space<vmem>>, %arg7: memref<40x128xf32, #tpu.memory_space<vmem>>) attributes {dimension_semantics = [#tpu.dimension_semantics<parallel>, #tpu.dimension_semantics<parallel>, #tpu.dimension_semantics<arbitrary>], iteration_bounds = array<i64: 1, 3, 1>, scalar_prefetch = 0 : i64, scratch_operands = 1 : i64, tpu.core_type = #tpu.core_type<tc>, window_params = [{transform_indices = @transform_0, window_bounds = array<i64: 40, 128>}, {transform_indices = @transform_1, window_bounds = array<i64: 128, 128>}, {transform_indices = @transform_2, window_bounds = array<i64: 1, 128>}, {transform_indices = @transform_3, window_bounds = array<i64: 40, 128>}]} {
    %c0_i32 = arith.constant 0 : i32
    %0 = arith.cmpi eq, %arg2, %c0_i32 : i32
    %1 = arith.extui %0 : i1 to i32
    %c0_i32_0 = arith.constant 0 : i32
    %2 = arith.cmpi ne, %1, %c0_i32_0 : i32
    scf.if %2 {
      %cst_10 = arith.constant 0.000000e+00 : f32
      %12 = vector.broadcast %cst_10 : f32 to vector<40x128xf32>
      %c0_11 = arith.constant 0 : index
      %c0_12 = arith.constant 0 : index
      %13 = vector.load %arg7[%c0_11, %c0_12] : memref<40x128xf32, #tpu.memory_space<vmem>>, vector<40x128xf32>
      tpu.vector_store %arg7[%c0_11, %c0_12], %12 {strides = array<i32>} : memref<40x128xf32, #tpu.memory_space<vmem>>, vector<40x128xf32>,
    } else {
    }
    %c0 = arith.constant 0 : index
    %c0_1 = arith.constant 0 : index
    %3 = vector.load %arg7[%c0, %c0_1] : memref<40x128xf32, #tpu.memory_space<vmem>>, vector<40x128xf32>
    %c0_2 = arith.constant 0 : index
    %c0_3 = arith.constant 0 : index
    %4 = vector.load %arg3[%c0_2, %c0_3] : memref<40x128xbf16, #tpu.memory_space<vmem>>, vector<40x128xbf16>
    %c0_4 = arith.constant 0 : index
    %c0_5 = arith.constant 0 : index
    %5 = vector.load %arg4[%c0_4, %c0_5] : memref<128x128xbf16, #tpu.memory_space<vmem>>, vector<128x128xbf16>
    %cst = arith.constant dense<0.000000e+00> : vector<40x128xf32>
    %6 = tpu.matmul %4, %5, %cst {dimension_numbers = #tpu.dot_dimension_numbers<[1], [0], [0], [1], [0, 0, 1, 1], [], []>} : vector<40x128xbf16>, vector<128x128xbf16>, vector<40x128xf32> -> vector<40x128xf32>
    %7 = arith.addf %3, %6 : vector<40x128xf32>
    %c0_6 = arith.constant 0 : index
    %c0_7 = arith.constant 0 : index
    %8 = vector.load %arg7[%c0_6, %c0_7] : memref<40x128xf32, #tpu.memory_space<vmem>>, vector<40x128xf32>
    tpu.vector_store %arg7[%c0_6, %c0_7], %7 {strides = array<i32>} : memref<40x128xf32, #tpu.memory_space<vmem>>, vector<40x128xf32>,
    %c0_i32_8 = arith.constant 0 : i32
    %9 = arith.cmpi eq, %arg2, %c0_i32_8 : i32
    %10 = arith.extui %9 : i1 to i32
    %c0_i32_9 = arith.constant 0 : i32
    %11 = arith.cmpi ne, %10, %c0_i32_9 : i32
    scf.if %11 {
      %c0_10 = arith.constant 0 : index
      %c0_11 = arith.constant 0 : index
      %12 = vector.load %arg7[%c0_10, %c0_11] : memref<40x128xf32, #tpu.memory_space<vmem>>, vector<40x128xf32>
      %c0_12 = arith.constant 0 : index
      %c0_13 = arith.constant 0 : index
      %13 = vector.load %arg5[%c0_12, %c0_13] : memref<1x128xf32, #tpu.memory_space<vmem>>, vector<1x128xf32>
      %14 = vector.broadcast %13 : vector<1x128xf32> to vector<40x128xf32>
      %15 = arith.addf %12, %14 : vector<40x128xf32>
      %c0_14 = arith.constant 0 : index
      %c0_15 = arith.constant 0 : index
      %16 = vector.load %arg6[%c0_14, %c0_15] : memref<40x128xf32, #tpu.memory_space<vmem>>, vector<40x128xf32>
      tpu.vector_store %arg6[%c0_14, %c0_15], %15 {strides = array<i32>} : memref<40x128xf32, #tpu.memory_space<vmem>>, vector<40x128xf32>,
    } else {
    }
    return
  }
  func.func @transform_0(%arg0: i32, %arg1: i32, %arg2: i32) -> (i32, i32) {
    %c0_i32 = arith.constant 0 : i32
    return %arg0, %arg2 : i32, i32
  }
  func.func @transform_1(%arg0: i32, %arg1: i32, %arg2: i32) -> (i32, i32) {
    %c0_i32 = arith.constant 0 : i32
    return %arg2, %arg1 : i32, i32
  }
  func.func @transform_2(%arg0: i32, %arg1: i32, %arg2: i32) -> (i32, i32) {
    %c0_i32 = arith.constant 0 : i32
    %c0_i32_0 = arith.constant 0 : i32
    return %c0_i32, %arg1 : i32, i32
  }
  func.func @transform_3(%arg0: i32, %arg1: i32, %arg2: i32) -> (i32, i32) {
    %c0_i32 = arith.constant 0 : i32
    return %arg0, %arg1 : i32, i32
  }
}

module attributes {stable_mosaic.version = 11 : i64} {
  func.func @_attention_kernel(%arg0: i32, %arg1: memref<1x17x32xbf16, #tpu.memory_space<vmem>>, %arg2: memref<1x17x32xbf16, #tpu.memory_space<vmem>>, %arg3: memref<1x17x32xbf16, #tpu.memory_space<vmem>>, %arg4: memref<1x17x32xf32, #tpu.memory_space<vmem>>) attributes {dimension_semantics = [#tpu.dimension_semantics<parallel>], iteration_bounds = array<i64: 8>, scalar_prefetch = 0 : i64, scratch_operands = 0 : i64, tpu.core_type = #tpu.core_type<tc>, window_params = [{transform_indices = @transform_0, window_bounds = array<i64: 1, 17, 32>}, {transform_indices = @transform_1, window_bounds = array<i64: 1, 17, 32>}, {transform_indices = @transform_2, window_bounds = array<i64: 1, 17, 32>}, {transform_indices = @transform_3, window_bounds = array<i64: 1, 17, 32>}]} {
    %c0 = arith.constant 0 : index
    %c0_0 = arith.constant 0 : index
    %c0_1 = arith.constant 0 : index
    %0 = vector.load %arg1[%c0, %c0_0, %c0_1] : memref<1x17x32xbf16, #tpu.memory_space<vmem>>, vector<1x17x32xbf16>
    %1 = vector.shape_cast %0 : vector<1x17x32xbf16> to vector<17x32xbf16>
    %2 = arith.extf %1 : vector<17x32xbf16> to vector<17x32xf32>
    %c0_2 = arith.constant 0 : index
    %c0_3 = arith.constant 0 : index
    %c0_4 = arith.constant 0 : index
    %3 = vector.load %arg2[%c0_2, %c0_3, %c0_4] : memref<1x17x32xbf16, #tpu.memory_space<vmem>>, vector<1x17x32xbf16>
    %4 = vector.shape_cast %3 : vector<1x17x32xbf16> to vector<17x32xbf16>
    %5 = arith.extf %4 : vector<17x32xbf16> to vector<17x32xf32>
    %c0_5 = arith.constant 0 : index
    %c0_6 = arith.constant 0 : index
    %c0_7 = arith.constant 0 : index
    %6 = vector.load %arg3[%c0_5, %c0_6, %c0_7] : memref<1x17x32xbf16, #tpu.memory_space<vmem>>, vector<1x17x32xbf16>
    %7 = vector.shape_cast %6 : vector<1x17x32xbf16> to vector<17x32xbf16>
    %cst = arith.constant dense<0.000000e+00> : vector<17x17xf32>
    %8 = tpu.matmul %2, %5, %cst {dimension_numbers = #tpu.dot_dimension_numbers<[1], [1], [0], [0], [0, 0, 1, 0], [], []>} : vector<17x32xf32>, vector<17x32xf32>, vector<17x17xf32> -> vector<17x17xf32>
    %cst_8 = arith.constant 0.176776692 : f32
    %9 = vector.broadcast %cst_8 : f32 to vector<17x17xf32>
    %10 = arith.mulf %8, %9 : vector<17x17xf32>
    %cst_9 = arith.constant dense<0xFF800000> : vector<17xf32>
    %11 = vector.multi_reduction <maximumf>, %10, %cst_9 [1] : vector<17x17xf32> to vector<17xf32>
    %12 = vector.shape_cast %11 : vector<17xf32> to vector<17x1xf32>
    %13 = vector.broadcast %12 : vector<17x1xf32> to vector<17x17xf32>
    %14 = arith.subf %10, %13 : vector<17x17xf32>
    %15 = math.exp %14 : vector<17x17xf32>
    %cst_10 = arith.constant dense<0.000000e+00> : vector<17xf32>
    %16 = vector.multi_reduction <add>, %15, %cst_10 [1] : vector<17x17xf32> to vector<17xf32>
    %17 = vector.shape_cast %16 : vector<17xf32> to vector<17x1xf32>
    %18 = arith.truncf %15 : vector<17x17xf32> to vector<17x17xbf16>
    %cst_11 = arith.constant dense<0.000000e+00> : vector<17x32xf32>
    %19 = tpu.matmul %18, %7, %cst_11 {dimension_numbers = #tpu.dot_dimension_numbers<[1], [0], [0], [1], [0, 0, 1, 1], [], []>} : vector<17x17xbf16>, vector<17x32xbf16>, vector<17x32xf32> -> vector<17x32xf32>
    %20 = vector.broadcast %17 : vector<17x1xf32> to vector<17x32xf32>
    %21 = arith.divf %19, %20 : vector<17x32xf32>
    %c0_12 = arith.constant 0 : index
    %c0_13 = arith.constant 0 : index
    %c0_14 = arith.constant 0 : index
    %22 = vector.load %arg4[%c0_12, %c0_13, %c0_14] : memref<1x17x32xf32, #tpu.memory_space<vmem>>, vector<1x17x32xf32>
    %23 = vector.shape_cast %22 : vector<1x17x32xf32> to vector<17x32xf32>
    %24 = vector.shape_cast %21 : vector<17x32xf32> to vector<1x17x32xf32>
    tpu.vector_store %arg4[%c0_12, %c0_13, %c0_14], %24 {strides = array<i32>} : memref<1x17x32xf32, #tpu.memory_space<vmem>>, vector<1x17x32xf32>,
    return
  }
  func.func @transform_0(%arg0: i32) -> (i32, i32, i32) {
    %c0_i32 = arith.constant 0 : i32
    %c0_i32_0 = arith.constant 0 : i32
    %c0_i32_1 = arith.constant 0 : i32
    return %arg0, %c0_i32, %c0_i32_0 : i32, i32, i32
  }
  func.func @transform_1(%arg0: i32) -> (i32, i32, i32) {
    %c0_i32 = arith.constant 0 : i32
    %c0_i32_0 = arith.constant 0 : i32
    %c0_i32_1 = arith.constant 0 : i32
    return %arg0, %c0_i32, %c0_i32_0 : i32, i32, i32
  }
  func.func @transform_2(%arg0: i32) -> (i32, i32, i32) {
    %c0_i32 = arith.constant 0 : i32
    %c0_i32_0 = arith.constant 0 : i32
    %c0_i32_1 = arith.constant 0 : i32
    return %arg0, %c0_i32, %c0_i32_0 : i32, i32, i32
  }
  func.func @transform_3(%arg0: i32) -> (i32, i32, i32) {
    %c0_i32 = arith.constant 0 : i32
    %c0_i32_0 = arith.constant 0 : i32
    %c0_i32_1 = arith.constant 0 : i32
    return %arg0, %c0_i32, %c0_i32_0 : i32, i32, i32
  }
}

module attributes {stable_mosaic.version = 11 : i64} {
  func.func @_matmul_bias_act_kernel(%arg0: i32, %arg1: i32, %arg2: i32, %arg3: memref<40x128xbf16, #tpu.memory_space<vmem>>, %arg4: memref<128x128xbf16, #tpu.memory_space<vmem>>, %arg5: memref<1x128xf32, #tpu.memory_space<vmem>>, %arg6: memref<40x128xf32, #tpu.memory_space<vmem>>, %arg7: memref<40x128xf32, #tpu.memory_space<vmem>>, %arg8: memref<40x128xf32, #tpu.memory_space<vmem>>) attributes {dimension_semantics = [#tpu.dimension_semantics<parallel>, #tpu.dimension_semantics<parallel>, #tpu.dimension_semantics<arbitrary>], iteration_bounds = array<i64: 1, 1, 1>, scalar_prefetch = 0 : i64, scratch_operands = 1 : i64, tpu.core_type = #tpu.core_type<tc>, window_params = [{transform_indices = @transform_0, window_bounds = array<i64: 40, 128>}, {transform_indices = @transform_1, window_bounds = array<i64: 128, 128>}, {transform_indices = @transform_2, window_bounds = array<i64: 1, 128>}, {transform_indices = @transform_3, window_bounds = array<i64: 40, 128>}, {transform_indices = @transform_4, window_bounds = array<i64: 40, 128>}]} {
    %c0_i32 = arith.constant 0 : i32
    %0 = arith.cmpi eq, %arg2, %c0_i32 : i32
    %1 = arith.extui %0 : i1 to i32
    %c0_i32_0 = arith.constant 0 : i32
    %2 = arith.cmpi ne, %1, %c0_i32_0 : i32
    scf.if %2 {
      %cst_10 = arith.constant 0.000000e+00 : f32
      %12 = vector.broadcast %cst_10 : f32 to vector<40x128xf32>
      %c0_11 = arith.constant 0 : index
      %c0_12 = arith.constant 0 : index
      %13 = vector.load %arg8[%c0_11, %c0_12] : memref<40x128xf32, #tpu.memory_space<vmem>>, vector<40x128xf32>
      tpu.vector_store %arg8[%c0_11, %c0_12], %12 {strides = array<i32>} : memref<40x128xf32, #tpu.memory_space<vmem>>, vector<40x128xf32>,
    } else {
    }
    %c0 = arith.constant 0 : index
    %c0_1 = arith.constant 0 : index
    %3 = vector.load %arg8[%c0, %c0_1] : memref<40x128xf32, #tpu.memory_space<vmem>>, vector<40x128xf32>
    %c0_2 = arith.constant 0 : index
    %c0_3 = arith.constant 0 : index
    %4 = vector.load %arg3[%c0_2, %c0_3] : memref<40x128xbf16, #tpu.memory_space<vmem>>, vector<40x128xbf16>
    %c0_4 = arith.constant 0 : index
    %c0_5 = arith.constant 0 : index
    %5 = vector.load %arg4[%c0_4, %c0_5] : memref<128x128xbf16, #tpu.memory_space<vmem>>, vector<128x128xbf16>
    %cst = arith.constant dense<0.000000e+00> : vector<40x128xf32>
    %6 = tpu.matmul %4, %5, %cst {dimension_numbers = #tpu.dot_dimension_numbers<[1], [0], [0], [1], [0, 0, 1, 1], [], []>} : vector<40x128xbf16>, vector<128x128xbf16>, vector<40x128xf32> -> vector<40x128xf32>
    %7 = arith.addf %3, %6 : vector<40x128xf32>
    %c0_6 = arith.constant 0 : index
    %c0_7 = arith.constant 0 : index
    %8 = vector.load %arg8[%c0_6, %c0_7] : memref<40x128xf32, #tpu.memory_space<vmem>>, vector<40x128xf32>
    tpu.vector_store %arg8[%c0_6, %c0_7], %7 {strides = array<i32>} : memref<40x128xf32, #tpu.memory_space<vmem>>, vector<40x128xf32>,
    %c0_i32_8 = arith.constant 0 : i32
    %9 = arith.cmpi eq, %arg2, %c0_i32_8 : i32
    %10 = arith.extui %9 : i1 to i32
    %c0_i32_9 = arith.constant 0 : i32
    %11 = arith.cmpi ne, %10, %c0_i32_9 : i32
    scf.if %11 {
      %c0_10 = arith.constant 0 : index
      %c0_11 = arith.constant 0 : index
      %12 = vector.load %arg8[%c0_10, %c0_11] : memref<40x128xf32, #tpu.memory_space<vmem>>, vector<40x128xf32>
      %c0_12 = arith.constant 0 : index
      %c0_13 = arith.constant 0 : index
      %13 = vector.load %arg5[%c0_12, %c0_13] : memref<1x128xf32, #tpu.memory_space<vmem>>, vector<1x128xf32>
      %14 = vector.broadcast %13 : vector<1x128xf32> to vector<40x128xf32>
      %15 = arith.addf %12, %14 : vector<40x128xf32>
      %c0_14 = arith.constant 0 : index
      %c0_15 = arith.constant 0 : index
      %16 = vector.load %arg6[%c0_14, %c0_15] : memref<40x128xf32, #tpu.memory_space<vmem>>, vector<40x128xf32>
      %17 = arith.addf %15, %16 : vector<40x128xf32>
      %c0_16 = arith.constant 0 : index
      %c0_17 = arith.constant 0 : index
      %18 = vector.load %arg7[%c0_16, %c0_17] : memref<40x128xf32, #tpu.memory_space<vmem>>, vector<40x128xf32>
      tpu.vector_store %arg7[%c0_16, %c0_17], %17 {strides = array<i32>} : memref<40x128xf32, #tpu.memory_space<vmem>>, vector<40x128xf32>,
    } else {
    }
    return
  }
  func.func @transform_0(%arg0: i32, %arg1: i32, %arg2: i32) -> (i32, i32) {
    %c0_i32 = arith.constant 0 : i32
    return %arg0, %arg2 : i32, i32
  }
  func.func @transform_1(%arg0: i32, %arg1: i32, %arg2: i32) -> (i32, i32) {
    %c0_i32 = arith.constant 0 : i32
    return %arg2, %arg1 : i32, i32
  }
  func.func @transform_2(%arg0: i32, %arg1: i32, %arg2: i32) -> (i32, i32) {
    %c0_i32 = arith.constant 0 : i32
    %c0_i32_0 = arith.constant 0 : i32
    return %c0_i32, %arg1 : i32, i32
  }
  func.func @transform_3(%arg0: i32, %arg1: i32, %arg2: i32) -> (i32, i32) {
    %c0_i32 = arith.constant 0 : i32
    return %arg0, %arg1 : i32, i32
  }
  func.func @transform_4(%arg0: i32, %arg1: i32, %arg2: i32) -> (i32, i32) {
    %c0_i32 = arith.constant 0 : i32
    return %arg0, %arg1 : i32, i32
  }
}

module attributes {stable_mosaic.version = 11 : i64} {
  func.func @_matmul_bias_act_kernel(%arg0: i32, %arg1: i32, %arg2: i32, %arg3: memref<40x128xbf16, #tpu.memory_space<vmem>>, %arg4: memref<128x256xbf16, #tpu.memory_space<vmem>>, %arg5: memref<1x256xf32, #tpu.memory_space<vmem>>, %arg6: memref<40x256xf32, #tpu.memory_space<vmem>>, %arg7: memref<40x256xf32, #tpu.memory_space<vmem>>) attributes {dimension_semantics = [#tpu.dimension_semantics<parallel>, #tpu.dimension_semantics<parallel>, #tpu.dimension_semantics<arbitrary>], iteration_bounds = array<i64: 1, 2, 1>, scalar_prefetch = 0 : i64, scratch_operands = 1 : i64, tpu.core_type = #tpu.core_type<tc>, window_params = [{transform_indices = @transform_0, window_bounds = array<i64: 40, 128>}, {transform_indices = @transform_1, window_bounds = array<i64: 128, 256>}, {transform_indices = @transform_2, window_bounds = array<i64: 1, 256>}, {transform_indices = @transform_3, window_bounds = array<i64: 40, 256>}]} {
    %c0_i32 = arith.constant 0 : i32
    %0 = arith.cmpi eq, %arg2, %c0_i32 : i32
    %1 = arith.extui %0 : i1 to i32
    %c0_i32_0 = arith.constant 0 : i32
    %2 = arith.cmpi ne, %1, %c0_i32_0 : i32
    scf.if %2 {
      %cst_10 = arith.constant 0.000000e+00 : f32
      %12 = vector.broadcast %cst_10 : f32 to vector<40x256xf32>
      %c0_11 = arith.constant 0 : index
      %c0_12 = arith.constant 0 : index
      %13 = vector.load %arg7[%c0_11, %c0_12] : memref<40x256xf32, #tpu.memory_space<vmem>>, vector<40x256xf32>
      tpu.vector_store %arg7[%c0_11, %c0_12], %12 {strides = array<i32>} : memref<40x256xf32, #tpu.memory_space<vmem>>, vector<40x256xf32>,
    } else {
    }
    %c0 = arith.constant 0 : index
    %c0_1 = arith.constant 0 : index
    %3 = vector.load %arg7[%c0, %c0_1] : memref<40x256xf32, #tpu.memory_space<vmem>>, vector<40x256xf32>
    %c0_2 = arith.constant 0 : index
    %c0_3 = arith.constant 0 : index
    %4 = vector.load %arg3[%c0_2, %c0_3] : memref<40x128xbf16, #tpu.memory_space<vmem>>, vector<40x128xbf16>
    %c0_4 = arith.constant 0 : index
    %c0_5 = arith.constant 0 : index
    %5 = vector.load %arg4[%c0_4, %c0_5] : memref<128x256xbf16, #tpu.memory_space<vmem>>, vector<128x256xbf16>
    %cst = arith.constant dense<0.000000e+00> : vector<40x256xf32>
    %6 = tpu.matmul %4, %5, %cst {dimension_numbers = #tpu.dot_dimension_numbers<[1], [0], [0], [1], [0, 0, 1, 1], [], []>} : vector<40x128xbf16>, vector<128x256xbf16>, vector<40x256xf32> -> vector<40x256xf32>
    %7 = arith.addf %3, %6 : vector<40x256xf32>
    %c0_6 = arith.constant 0 : index
    %c0_7 = arith.constant 0 : index
    %8 = vector.load %arg7[%c0_6, %c0_7] : memref<40x256xf32, #tpu.memory_space<vmem>>, vector<40x256xf32>
    tpu.vector_store %arg7[%c0_6, %c0_7], %7 {strides = array<i32>} : memref<40x256xf32, #tpu.memory_space<vmem>>, vector<40x256xf32>,
    %c0_i32_8 = arith.constant 0 : i32
    %9 = arith.cmpi eq, %arg2, %c0_i32_8 : i32
    %10 = arith.extui %9 : i1 to i32
    %c0_i32_9 = arith.constant 0 : i32
    %11 = arith.cmpi ne, %10, %c0_i32_9 : i32
    scf.if %11 {
      %c0_10 = arith.constant 0 : index
      %c0_11 = arith.constant 0 : index
      %12 = vector.load %arg7[%c0_10, %c0_11] : memref<40x256xf32, #tpu.memory_space<vmem>>, vector<40x256xf32>
      %c0_12 = arith.constant 0 : index
      %c0_13 = arith.constant 0 : index
      %13 = vector.load %arg5[%c0_12, %c0_13] : memref<1x256xf32, #tpu.memory_space<vmem>>, vector<1x256xf32>
      %14 = vector.broadcast %13 : vector<1x256xf32> to vector<40x256xf32>
      %15 = arith.addf %12, %14 : vector<40x256xf32>
      %16 = arith.mulf %15, %15 : vector<40x256xf32>
      %17 = arith.mulf %15, %16 : vector<40x256xf32>
      %cst_14 = arith.constant 4.471500e-02 : f32
      %18 = vector.broadcast %cst_14 : f32 to vector<40x256xf32>
      %19 = arith.mulf %18, %17 : vector<40x256xf32>
      %20 = arith.addf %15, %19 : vector<40x256xf32>
      %cst_15 = arith.constant 0.797884583 : f32
      %21 = vector.broadcast %cst_15 : f32 to vector<40x256xf32>
      %22 = arith.mulf %21, %20 : vector<40x256xf32>
      %23 = math.tanh %22 : vector<40x256xf32>
      %cst_16 = arith.constant 1.000000e+00 : f32
      %24 = vector.broadcast %cst_16 : f32 to vector<40x256xf32>
      %25 = arith.addf %24, %23 : vector<40x256xf32>
      %cst_17 = arith.constant 5.000000e-01 : f32
      %26 = vector.broadcast %cst_17 : f32 to vector<40x256xf32>
      %27 = arith.mulf %26, %25 : vector<40x256xf32>
      %28 = arith.mulf %15, %27 : vector<40x256xf32>
      %c0_18 = arith.constant 0 : index
      %c0_19 = arith.constant 0 : index
      %29 = vector.load %arg6[%c0_18, %c0_19] : memref<40x256xf32, #tpu.memory_space<vmem>>, vector<40x256xf32>
      tpu.vector_store %arg6[%c0_18, %c0_19], %28 {strides = array<i32>} : memref<40x256xf32, #tpu.memory_space<vmem>>, vector<40x256xf32>,
    } else {
    }
    return
  }
  func.func @transform_0(%arg0: i32, %arg1: i32, %arg2: i32) -> (i32, i32) {
    %c0_i32 = arith.constant 0 : i32
    return %arg0, %arg2 : i32, i32
  }
  func.func @transform_1(%arg0: i32, %arg1: i32, %arg2: i32) -> (i32, i32) {
    %c0_i32 = arith.constant 0 : i32
    return %arg2, %arg1 : i32, i32
  }
  func.func @transform_2(%arg0: i32, %arg1: i32, %arg2: i32) -> (i32, i32) {
    %c0_i32 = arith.constant 0 : i32
    %c0_i32_0 = arith.constant 0 : i32
    return %c0_i32, %arg1 : i32, i32
  }
  func.func @transform_3(%arg0: i32, %arg1: i32, %arg2: i32) -> (i32, i32) {
    %c0_i32 = arith.constant 0 : i32
    return %arg0, %arg1 : i32, i32
  }
}

module attributes {stable_mosaic.version = 11 : i64} {
  func.func @_matmul_bias_act_kernel(%arg0: i32, %arg1: i32, %arg2: i32, %arg3: memref<40x512xbf16, #tpu.memory_space<vmem>>, %arg4: memref<512x128xbf16, #tpu.memory_space<vmem>>, %arg5: memref<1x128xf32, #tpu.memory_space<vmem>>, %arg6: memref<40x128xf32, #tpu.memory_space<vmem>>, %arg7: memref<40x128xf32, #tpu.memory_space<vmem>>, %arg8: memref<40x128xf32, #tpu.memory_space<vmem>>) attributes {dimension_semantics = [#tpu.dimension_semantics<parallel>, #tpu.dimension_semantics<parallel>, #tpu.dimension_semantics<arbitrary>], iteration_bounds = array<i64: 1, 1, 1>, scalar_prefetch = 0 : i64, scratch_operands = 1 : i64, tpu.core_type = #tpu.core_type<tc>, window_params = [{transform_indices = @transform_0, window_bounds = array<i64: 40, 512>}, {transform_indices = @transform_1, window_bounds = array<i64: 512, 128>}, {transform_indices = @transform_2, window_bounds = array<i64: 1, 128>}, {transform_indices = @transform_3, window_bounds = array<i64: 40, 128>}, {transform_indices = @transform_4, window_bounds = array<i64: 40, 128>}]} {
    %c0_i32 = arith.constant 0 : i32
    %0 = arith.cmpi eq, %arg2, %c0_i32 : i32
    %1 = arith.extui %0 : i1 to i32
    %c0_i32_0 = arith.constant 0 : i32
    %2 = arith.cmpi ne, %1, %c0_i32_0 : i32
    scf.if %2 {
      %cst_10 = arith.constant 0.000000e+00 : f32
      %12 = vector.broadcast %cst_10 : f32 to vector<40x128xf32>
      %c0_11 = arith.constant 0 : index
      %c0_12 = arith.constant 0 : index
      %13 = vector.load %arg8[%c0_11, %c0_12] : memref<40x128xf32, #tpu.memory_space<vmem>>, vector<40x128xf32>
      tpu.vector_store %arg8[%c0_11, %c0_12], %12 {strides = array<i32>} : memref<40x128xf32, #tpu.memory_space<vmem>>, vector<40x128xf32>,
    } else {
    }
    %c0 = arith.constant 0 : index
    %c0_1 = arith.constant 0 : index
    %3 = vector.load %arg8[%c0, %c0_1] : memref<40x128xf32, #tpu.memory_space<vmem>>, vector<40x128xf32>
    %c0_2 = arith.constant 0 : index
    %c0_3 = arith.constant 0 : index
    %4 = vector.load %arg3[%c0_2, %c0_3] : memref<40x512xbf16, #tpu.memory_space<vmem>>, vector<40x512xbf16>
    %c0_4 = arith.constant 0 : index
    %c0_5 = arith.constant 0 : index
    %5 = vector.load %arg4[%c0_4, %c0_5] : memref<512x128xbf16, #tpu.memory_space<vmem>>, vector<512x128xbf16>
    %cst = arith.constant dense<0.000000e+00> : vector<40x128xf32>
    %6 = tpu.matmul %4, %5, %cst {dimension_numbers = #tpu.dot_dimension_numbers<[1], [0], [0], [1], [0, 0, 1, 1], [], []>} : vector<40x512xbf16>, vector<512x128xbf16>, vector<40x128xf32> -> vector<40x128xf32>
    %7 = arith.addf %3, %6 : vector<40x128xf32>
    %c0_6 = arith.constant 0 : index
    %c0_7 = arith.constant 0 : index
    %8 = vector.load %arg8[%c0_6, %c0_7] : memref<40x128xf32, #tpu.memory_space<vmem>>, vector<40x128xf32>
    tpu.vector_store %arg8[%c0_6, %c0_7], %7 {strides = array<i32>} : memref<40x128xf32, #tpu.memory_space<vmem>>, vector<40x128xf32>,
    %c0_i32_8 = arith.constant 0 : i32
    %9 = arith.cmpi eq, %arg2, %c0_i32_8 : i32
    %10 = arith.extui %9 : i1 to i32
    %c0_i32_9 = arith.constant 0 : i32
    %11 = arith.cmpi ne, %10, %c0_i32_9 : i32
    scf.if %11 {
      %c0_10 = arith.constant 0 : index
      %c0_11 = arith.constant 0 : index
      %12 = vector.load %arg8[%c0_10, %c0_11] : memref<40x128xf32, #tpu.memory_space<vmem>>, vector<40x128xf32>
      %c0_12 = arith.constant 0 : index
      %c0_13 = arith.constant 0 : index
      %13 = vector.load %arg5[%c0_12, %c0_13] : memref<1x128xf32, #tpu.memory_space<vmem>>, vector<1x128xf32>
      %14 = vector.broadcast %13 : vector<1x128xf32> to vector<40x128xf32>
      %15 = arith.addf %12, %14 : vector<40x128xf32>
      %c0_14 = arith.constant 0 : index
      %c0_15 = arith.constant 0 : index
      %16 = vector.load %arg6[%c0_14, %c0_15] : memref<40x128xf32, #tpu.memory_space<vmem>>, vector<40x128xf32>
      %17 = arith.addf %15, %16 : vector<40x128xf32>
      %c0_16 = arith.constant 0 : index
      %c0_17 = arith.constant 0 : index
      %18 = vector.load %arg7[%c0_16, %c0_17] : memref<40x128xf32, #tpu.memory_space<vmem>>, vector<40x128xf32>
      tpu.vector_store %arg7[%c0_16, %c0_17], %17 {strides = array<i32>} : memref<40x128xf32, #tpu.memory_space<vmem>>, vector<40x128xf32>,
    } else {
    }
    return
  }
  func.func @transform_0(%arg0: i32, %arg1: i32, %arg2: i32) -> (i32, i32) {
    %c0_i32 = arith.constant 0 : i32
    return %arg0, %arg2 : i32, i32
  }
  func.func @transform_1(%arg0: i32, %arg1: i32, %arg2: i32) -> (i32, i32) {
    %c0_i32 = arith.constant 0 : i32
    return %arg2, %arg1 : i32, i32
  }
  func.func @transform_2(%arg0: i32, %arg1: i32, %arg2: i32) -> (i32, i32) {
    %c0_i32 = arith.constant 0 : i32
    %c0_i32_0 = arith.constant 0 : i32
    return %c0_i32, %arg1 : i32, i32
  }
  func.func @transform_3(%arg0: i32, %arg1: i32, %arg2: i32) -> (i32, i32) {
    %c0_i32 = arith.constant 0 : i32
    return %arg0, %arg1 : i32, i32
  }
  func.func @transform_4(%arg0: i32, %arg1: i32, %arg2: i32) -> (i32, i32) {
    %c0_i32 = arith.constant 0 : i32
    return %arg0, %arg1 : i32, i32
  }
}

module attributes {stable_mosaic.version = 11 : i64} {
  func.func @_pool_norm_kernel(%arg0: i32, %arg1: memref<1x16x128xf32, #tpu.memory_space<vmem>>, %arg2: memref<1x128xf32, #tpu.memory_space<vmem>>, %arg3: memref<1x128xf32, #tpu.memory_space<vmem>>, %arg4: memref<1x1x128xf32, #tpu.memory_space<vmem>>) attributes {dimension_semantics = [#tpu.dimension_semantics<parallel>], iteration_bounds = array<i64: 2>, scalar_prefetch = 0 : i64, scratch_operands = 0 : i64, tpu.core_type = #tpu.core_type<tc>, window_params = [{transform_indices = @transform_0, window_bounds = array<i64: 1, 16, 128>}, {pipeline_mode = #tpu.pipeline_mode<synchronous>, transform_indices = @transform_1, window_bounds = array<i64: 1, 128>}, {pipeline_mode = #tpu.pipeline_mode<synchronous>, transform_indices = @transform_2, window_bounds = array<i64: 1, 128>}, {transform_indices = @transform_3, window_bounds = array<i64: 1, 1, 128>}]} {
    %c0 = arith.constant 0 : index
    %c0_0 = arith.constant 0 : index
    %c0_1 = arith.constant 0 : index
    %0 = vector.load %arg1[%c0, %c0_0, %c0_1] : memref<1x16x128xf32, #tpu.memory_space<vmem>>, vector<1x16x128xf32>
    %1 = vector.shape_cast %0 : vector<1x16x128xf32> to vector<16x128xf32>
    %cst = arith.constant dense<0.000000e+00> : vector<128xf32>
    %2 = vector.multi_reduction <add>, %1, %cst [0] : vector<16x128xf32> to vector<128xf32>
    %3 = vector.shape_cast %2 : vector<128xf32> to vector<1x128xf32>
    %cst_2 = arith.constant 1.600000e+01 : f32
    %4 = vector.broadcast %cst_2 : f32 to vector<1x128xf32>
    %5 = arith.divf %3, %4 : vector<1x128xf32>
    %cst_3 = arith.constant dense<0.000000e+00> : vector<1xf32>
    %6 = vector.multi_reduction <add>, %5, %cst_3 [1] : vector<1x128xf32> to vector<1xf32>
    %7 = vector.shape_cast %6 : vector<1xf32> to vector<1x1xf32>
    %cst_4 = arith.constant 1.280000e+02 : f32
    %8 = vector.broadcast %cst_4 : f32 to vector<1x1xf32>
    %9 = arith.divf %7, %8 : vector<1x1xf32>
    %10 = vector.broadcast %9 : vector<1x1xf32> to vector<1x128xf32>
    %11 = arith.subf %5, %10 : vector<1x128xf32>
    %12 = arith.mulf %11, %11 : vector<1x128xf32>
    %cst_5 = arith.constant dense<0.000000e+00> : vector<1xf32>
    %13 = vector.multi_reduction <add>, %12, %cst_5 [1] : vector<1x128xf32> to vector<1xf32>
    %14 = vector.shape_cast %13 : vector<1xf32> to vector<1x1xf32>
    %cst_6 = arith.constant 1.280000e+02 : f32
    %15 = vector.broadcast %cst_6 : f32 to vector<1x1xf32>
    %16 = arith.divf %14, %15 : vector<1x1xf32>
    %cst_7 = arith.constant 9.99999997E-7 : f32
    %17 = vector.broadcast %cst_7 : f32 to vector<1x1xf32>
    %18 = arith.addf %16, %17 : vector<1x1xf32>
    %19 = math.rsqrt %18 : vector<1x1xf32>
    %20 = vector.broadcast %19 : vector<1x1xf32> to vector<1x128xf32>
    %21 = arith.mulf %11, %20 : vector<1x128xf32>
    %c0_8 = arith.constant 0 : index
    %c0_9 = arith.constant 0 : index
    %22 = vector.load %arg2[%c0_8, %c0_9] : memref<1x128xf32, #tpu.memory_space<vmem>>, vector<1x128xf32>
    %23 = arith.mulf %21, %22 : vector<1x128xf32>
    %c0_10 = arith.constant 0 : index
    %c0_11 = arith.constant 0 : index
    %24 = vector.load %arg3[%c0_10, %c0_11] : memref<1x128xf32, #tpu.memory_space<vmem>>, vector<1x128xf32>
    %25 = arith.addf %23, %24 : vector<1x128xf32>
    %c0_12 = arith.constant 0 : index
    %c0_13 = arith.constant 0 : index
    %c0_14 = arith.constant 0 : index
    %26 = vector.load %arg4[%c0_12, %c0_13, %c0_14] : memref<1x1x128xf32, #tpu.memory_space<vmem>>, vector<1x1x128xf32>
    %27 = vector.shape_cast %26 : vector<1x1x128xf32> to vector<1x128xf32>
    %28 = vector.shape_cast %25 : vector<1x128xf32> to vector<1x1x128xf32>
    tpu.vector_store %arg4[%c0_12, %c0_13, %c0_14], %28 {strides = array<i32>} : memref<1x1x128xf32, #tpu.memory_space<vmem>>, vector<1x1x128xf32>,
    return
  }
  func.func @transform_0(%arg0: i32) -> (i32, i32, i32) {
    %c0_i32 = arith.constant 0 : i32
    %c0_i32_0 = arith.constant 0 : i32
    %c0_i32_1 = arith.constant 0 : i32
    return %arg0, %c0_i32, %c0_i32_0 : i32, i32, i32
  }
  func.func @transform_1(%arg0: i32) -> (i32, i32) {
    %c0_i32 = arith.constant 0 : i32
    %c0_i32_0 = arith.constant 0 : i32
    %c0_i32_1 = arith.constant 0 : i32
    return %c0_i32, %c0_i32_0 : i32, i32
  }
  func.func @transform_2(%arg0: i32) -> (i32, i32) {
    %c0_i32 = arith.constant 0 : i32
    %c0_i32_0 = arith.constant 0 : i32
    %c0_i32_1 = arith.constant 0 : i32
    return %c0_i32, %c0_i32_0 : i32, i32
  }
  func.func @transform_3(%arg0: i32) -> (i32, i32, i32) {
    %c0_i32 = arith.constant 0 : i32
    %c0_i32_0 = arith.constant 0 : i32
    %c0_i32_1 = arith.constant 0 : i32
    return %arg0, %c0_i32, %c0_i32_0 : i32, i32, i32
  }
}

</mosaic_0001>

<bundles_post_ra>
// kernel: _lambda_.16
= control target key start
LH: loop header
LB: loop body
LE: loop exit
PB: predicated region body
PF: predicated region fallthrough
CT: control target
= control target key end

     0   :  { %s472_s1 = inlined_call_operand.vmem [shape: bf16[256,128], index: 1, kind: input, shape index: {}]   ;;  %s473_s0 = inlined_call_operand.vmem [shape: bf16[32,256], index: 0, kind: input, shape index: {}]   ;;  %s474_s2 = inlined_call_operand.vmem [shape: f32[1,128], index: 2, kind: input, shape index: {}]   ;;  %s475_s3 = inlined_call_operand.vmem [shape: f32[32,128], index: 3, kind: input, shape index: {}]   ;;  %s476_s4 = inlined_call_operand.vmem [shape: f32[32,128], index: 4, kind: output, shape index: {}]  }
   0x1   :  { %v338_v0 = vld [vmem:[%s472_s1 + $0x40] sm:$0xff]   ;;  %v340_v2 = vld [vmem:[%s472_s1 + $0x48] sm:$0xff]   ;;  %v342_v4 = vld [vmem:[%s472_s1 + $0x50] sm:$0xff]  }
   0x2   :  { %v339_v1 = vld [vmem:[%s472_s1] sm:$0xff]   ;;  %294 = vmatprep.subr.bf16.mxu0 %v338_v0  ;;  %322 = vmatprep.subr.bf16.mxu1 %v338_v0  ;;  %v341_v3 = vld [vmem:[%s472_s1 + $0x8] sm:$0xff]   ;;  %v343_v5 = vld [vmem:[%s472_s1 + $0x10] sm:$0xff]  }
   0x3   :  { %295 = vmatpush3.bf16.msra.mxu0 %v339_v1  ;;  %330 = vmatpush3.bf16.msra.mxu1 %v339_v1  ;;  %v344_v6 = vld [vmem:[%s472_s1 + $0x58] sm:$0xff]   ;;  %v346_v8 = vld [vmem:[%s472_s1 + $0x60] sm:$0xff]   ;;  %v348_v10 = vld [vmem:[%s472_s1 + $0x68] sm:$0xff]  }
   0x4   :  { %296 = vmatprep.subr.bf16.mxu0 %v340_v2  ;;  %323 = vmatprep.subr.bf16.mxu1 %v340_v2  ;;  %v345_v7 = vld [vmem:[%s472_s1 + $0x18] sm:$0xff]   ;;  %v347_v9 = vld [vmem:[%s472_s1 + $0x20] sm:$0xff]   ;;  %v349_v13 = vld [vmem:[%s472_s1 + $0x28] sm:$0xff]  }
   0x5   :  { %v356_v11 = vld [vmem:[%s473_s0 + $0x4] ss:$8 sps:$4 sm:$0xff]   ;;  %v359_v12 = vld [vmem:[%s473_s0 + $0x14] ss:$8 sps:$4 sm:$0xff]   ;;  %v354_v18 = vld [vmem:[%s473_s0] ss:$8 sps:$4 sm:$0xff]  }
   0x6   :  { %v350_v14 = vld [vmem:[%s472_s1 + $0x70] sm:$0xff]   ;;  %214 = vmatprep.mubr.bf16.mxu0 %v356_v11  ;;  %222 = vmatprep.mubr.bf16.mxu1 %v359_v12  ;;  %v352_v16 = vld [vmem:[%s472_s1 + $0x78] sm:$0xff]   ;;  %v293_v23 = vld [vmem:[%s474_s2] ss:$0 sm:$0xff] }
   0x7   :  { %297 = vmatpush3.bf16.msra.mxu0 %v341_v3  ;;  %331 = vmatpush3.bf16.msra.mxu1 %v341_v3  ;;  %v351_v15 = vld [vmem:[%s472_s1 + $0x30] sm:$0xff]   ;;  %v353_v17 = vld [vmem:[%s472_s1 + $0x38] sm:$0xff]   ;;  %v257_v29 = vld [vmem:[%s475_s3] sm:$0xff] }
   0x8   :  { %298 = vmatprep.subr.bf16.mxu0 %v342_v4  ;;  %324 = vmatprep.subr.bf16.mxu1 %v342_v4  ;;  %v357_v19 = vld [vmem:[%s473_s0 + $0x10] ss:$8 sps:$4 sm:$0xff]   ;;  %v258_v37 = vld [vmem:[%s475_s3 + $0x8] sm:$0xff] }
   0x9   :  { %v259_v30 = vld [vmem:[%s475_s3 + $0x10] sm:$0xff]  ;;  %v260_v38 = vld [vmem:[%s475_s3 + $0x18] sm:$0xff] }
   0xb   :  { %299 = vmatpush3.bf16.msra.mxu0 %v343_v5  ;;  %332 = vmatpush3.bf16.msra.mxu1 %v343_v5 }
   0xc   :  { %300 = vmatprep.subr.bf16.mxu0 %v344_v6  ;;  %325 = vmatprep.subr.bf16.mxu1 %v344_v6 }
   0xf   :  { %301 = vmatpush3.bf16.msra.mxu0 %v345_v7  ;;  %333 = vmatpush3.bf16.msra.mxu1 %v345_v7 }
  0x10   :  { %302 = vmatprep.subr.bf16.mxu0 %v346_v8  ;;  %326 = vmatprep.subr.bf16.mxu1 %v346_v8 }
  0x13   :  { %303 = vmatpush3.bf16.msra.mxu0 %v347_v9  ;;  %334 = vmatpush3.bf16.msra.mxu1 %v347_v9 }
  0x14   :  { %304 = vmatprep.subr.bf16.mxu0 %v348_v10  ;;  %327 = vmatprep.subr.bf16.mxu1 %v348_v10 }
  0x17   :  { %305 = vmatpush3.bf16.msra.mxu0 %v349_v13  ;;  %335 = vmatpush3.bf16.msra.mxu1 %v349_v13 }
  0x18   :  { %306 = vmatprep.subr.bf16.mxu0 %v350_v14  ;;  %328 = vmatprep.subr.bf16.mxu1 %v350_v14 }
  0x1b   :  { %307 = vmatpush3.bf16.msra.mxu0 %v351_v15  ;;  %336 = vmatpush3.bf16.msra.mxu1 %v351_v15 }
  0x1c   :  { %308 = vmatprep.subr.bf16.mxu0 %v352_v16  ;;  %329 = vmatprep.subr.bf16.mxu1 %v352_v16 }
  0x1f   :  { %309 = vmatpush3.bf16.msra.mxu0 %v353_v17  ;;  %337 = vmatpush3.bf16.msra.mxu1 %v353_v17 }
  0x22   :  { %215 = vmatmul.mubr.bf16.vlgmr.msra.gmra.mrb[0].mxu0 %v354_v18  ;;  %223 = vmatmul.mubr.bf16.vlgmr.msra.gmra.mrb[0].mxu1 %v357_v19 }
  0xf5   :  { %v310_v20 = vpop.f32.mrb[0].mxu0  ;;  %v316_v21 = vpop.f32.mrb[0].mxu1 }
  0xf6   :  { %v311_v22 = vpop.f32.mrb[1].mxu0  ;;  %v317_v24 = vpop.f32.mrb[1].mxu1 }
  0xf7   :  { %v312_v25 = vadd.f32 %v311_v22, %v310_v20  ;;  %v318_v26 = vadd.f32 %v317_v24, %v316_v21  ;;  %v313_v27 = vpop.f32.mrb[2].mxu0  ;;  %v319_v28 = vpop.f32.mrb[2].mxu1 }
  0xf8   :  { %v314_v31 = vpop.f32.mrb[3].mxu0  ;;  %v320_v32 = vpop.f32.mrb[3].mxu1 }
  0xf9   :  { %v253_v33 = vadd.f32 %v312_v25, %v293_v23  ;;  %v255_v34 = vadd.f32 %v318_v26, %v293_v23  ;;  %v315_v35 = vadd.f32 %v314_v31, %v313_v27  ;;  %v321_v36 = vadd.f32 %v320_v32, %v319_v28 }
  0xfb   :  { %v261_v39 = vadd.f32 %v257_v29, %v253_v33  ;;  %v263_v40 = vadd.f32 %v259_v30, %v255_v34  ;;  %v254_v41 = vadd.f32 %v315_v35, %v293_v23  ;;  %v256_v42 = vadd.f32 %v321_v36, %v293_v23 }
  0xfd   :  { %265 = vst [vmem:[%s476_s4] sm:$0xff] %v261_v39  ;;  %267 = vst [vmem:[%s476_s4 + $0x10] sm:$0xff] %v263_v40  ;;  %v262_v43 = vadd.f32 %v258_v37, %v254_v41  ;;  %v264_v44 = vadd.f32 %v260_v38, %v256_v42 }
  0xff   :  { %266 = vst [vmem:[%s476_s4 + $0x8] sm:$0xff] %v262_v43  ;;  %268 = vst [vmem:[%s476_s4 + $0x18] sm:$0xff] %v264_v44 }

// kernel: _lambda_.17
= control target key start
LH: loop header
LB: loop body
LE: loop exit
PB: predicated region body
PF: predicated region fallthrough
CT: control target
= control target key end

     0   :  { %s176_s0 = inlined_call_operand.vmem [shape: f32[40,128], index: 0, kind: input, shape index: {}]   ;;  %s177_s1 = inlined_call_operand.vmem [shape: f32[1,128], index: 1, kind: input, shape index: {}]   ;;  %s178_s2 = inlined_call_operand.vmem [shape: f32[1,128], index: 2, kind: input, shape index: {}]   ;;  %s179_s3 = inlined_call_operand.vmem [shape: f32[40,128], index: 3, kind: output, shape index: {}]  }
   0x1   :  { %v14_v0 = vld [vmem:[%s176_s0] sm:$0xff]  ;;  %v16_v1 = vld [vmem:[%s176_s0 + $0x10] sm:$0xff]  ;;  %v15_v2 = vld [vmem:[%s176_s0 + $0x8] sm:$0xff] }
   0x2   :  { %19 = vadd.xlane.f32.xlu0 %v14_v0  ;;  %23 = vadd.xlane.f32.xlu1 %v16_v1  ;;  %v17_v3 = vld [vmem:[%s176_s0 + $0x18] sm:$0xff]  ;;  %v18_v4 = vld [vmem:[%s176_s0 + $0x20] sm:$0xff] }
   0x3   :  { %v108_v41 = vld [vmem:[%s177_s1] ss:$0 sm:$0xff] }
   0x4   :  { %v109_v43 = vld [vmem:[%s178_s2] ss:$0 sm:$0xff] }
   0x6   :  { %21 = vadd.xlane.f32.xlu0 %v15_v2  ;;  %25 = vadd.xlane.f32.xlu1 %v17_v3 }
   0xa   :  { %27 = vadd.xlane.f32.xlu0 %v18_v4 }
  0x8f   :  { %v20_v5 = vpop.xlane.xlu0 %19  ;;  %v24_v6 = vpop.xlane.xlu1 %23 }
  0x90   :  { %v30_v7 = vmul.f32 0.0078125, %v20_v5  ;;  %v32_v8 = vmul.f32 0.0078125, %v24_v6 }
  0x92   :  { %v35_v9 = vsub.f32 %v14_v0, %v30_v7  ;;  %v37_v10 = vsub.f32 %v16_v1, %v32_v8 }
  0x93   :  { %v22_v11 = vpop.xlane.xlu0 %21  ;;  %v26_v12 = vpop.xlane.xlu1 %25 }
  0x94   :  { %v31_v13 = vmul.f32 0.0078125, %v22_v11  ;;  %v40_v14 = vmul.f32 %v35_v9, %v35_v9  ;;  %v33_v15 = vmul.f32 0.0078125, %v26_v12  ;;  %v42_v18 = vmul.f32 %v37_v10, %v37_v10 }
  0x96   :  { %v36_v16 = vsub.f32 %v15_v2, %v31_v13  ;;  %45 = vadd.xlane.f32.xlu1 %v40_v14  ;;  %v38_v17 = vsub.f32 %v17_v3, %v33_v15 }
  0x97   :  { %v28_v19 = vpop.xlane.xlu0 %27 }
  0x98   :  { %v34_v20 = vmul.f32 0.0078125, %v28_v19  ;;  %v41_v21 = vmul.f32 %v36_v16, %v36_v16  ;;  %v43_v23 = vmul.f32 %v38_v17, %v38_v17 }
  0x9a   :  { %v39_v22 = vsub.f32 %v18_v4, %v34_v20  ;;  %49 = vadd.xlane.f32.xlu1 %v42_v18  ;;  %47 = vadd.xlane.f32.xlu0 %v41_v21 }
  0x9c   :  { %v44_v24 = vmul.f32 %v39_v22, %v39_v22 }
  0x9e   :  { %51 = vadd.xlane.f32.xlu0 %v43_v23  ;;  %53 = vadd.xlane.f32.xlu1 %v44_v24 }
 0x123   :  { %v46_v25 = vpop.xlane.xlu1 %45 }
 0x124   :  { %v55_v26 = vmul.f32 0.0078125, %v46_v25 }
 0x126   :  { %v60_v27 = vadd.f32 1e-06, %v55_v26 }
 0x127   :  { %v50_v28 = vpop.xlane.xlu1 %49  ;;  %v48_v29 = vpop.xlane.xlu0 %47 }
 0x128   :  { %110 = vrsqrt.f32 %v60_v27  ;;  %v57_v30 = vmul.f32 0.0078125, %v50_v28  ;;  %v56_v31 = vmul.f32 0.0078125, %v48_v29 }
 0x12a   :  { %v62_v32 = vadd.f32 1e-06, %v57_v30  ;;  %v61_v33 = vadd.f32 1e-06, %v56_v31 }
 0x12b   :  { %v54_v34 = vpop.xlane.xlu1 %53  ;;  %v52_v35 = vpop.xlane.xlu0 %51 }
 0x12c   :  { %112 = vrsqrt.f32 %v62_v32  ;;  %v59_v36 = vmul.f32 0.0078125, %v54_v34  ;;  %v58_v37 = vmul.f32 0.0078125, %v52_v35 }
 0x12d   :  { %114 = vrsqrt.f32 %v61_v33 }
 0x12e   :  { %v64_v38 = vadd.f32 1e-06, %v59_v36  ;;  %v63_v39 = vadd.f32 1e-06, %v58_v37 }
 0x130   :  { %116 = vrsqrt.f32 %v64_v38 }
 0x131   :  { %118 = vrsqrt.f32 %v63_v39 }
 0x132   :  { %v111_v40 = vpop.eup %110 }
 0x133   :  { %v70_v42 = vmul.f32 %v111_v40, %v35_v9 }
 0x135   :  { %v82_v44 = vmul.f32 %v108_v41, %v70_v42 }
 0x136   :  { %v113_v45 = vpop.eup %112 }
 0x137   :  { %v115_v46 = vpop.eup %114  ;;  %v94_v47 = vadd.f32 %v109_v43, %v82_v44  ;;  %v72_v48 = vmul.f32 %v113_v45, %v37_v10 }
 0x138   :  { %v71_v49 = vmul.f32 %v115_v46, %v36_v16 }
 0x139   :  { %99 = vst [vmem:[%s179_s3] sm:$0xff] %v94_v47  ;;  %v84_v50 = vmul.f32 %v108_v41, %v72_v48 }
 0x13a   :  { %v117_v51 = vpop.eup %116  ;;  %v83_v52 = vmul.f32 %v108_v41, %v71_v49 }
 0x13b   :  { %v119_v53 = vpop.eup %118  ;;  %v96_v54 = vadd.f32 %v109_v43, %v84_v50  ;;  %v74_v55 = vmul.f32 %v117_v51, %v39_v22 }
 0x13c   :  { %v95_v56 = vadd.f32 %v109_v43, %v83_v52  ;;  %v73_v57 = vmul.f32 %v119_v53, %v38_v17 }
 0x13d   :  { %101 = vst [vmem:[%s179_s3 + $0x10] sm:$0xff] %v96_v54  ;;  %v86_v58 = vmul.f32 %v108_v41, %v74_v55 }
 0x13e   :  { %100 = vst [vmem:[%s179_s3 + $0x8] sm:$0xff] %v95_v56  ;;  %v85_v59 = vmul.f32 %v108_v41, %v73_v57 }
 0x13f   :  { %v98_v60 = vadd.f32 %v109_v43, %v86_v58 }
 0x140   :  { %v97_v61 = vadd.f32 %v109_v43, %v85_v59 }
 0x141   :  { %103 = vst [vmem:[%s179_s3 + $0x20] sm:$0xff] %v98_v60 }
 0x142   :  { %102 = vst [vmem:[%s179_s3 + $0x18] sm:$0xff] %v97_v61 }

// kernel: _lambda_.18
= control target key start
LH: loop header
LB: loop body
LE: loop exit
PB: predicated region body
PF: predicated region fallthrough
CT: control target
= control target key end

     0   :  { %s886_s12 = smov 0   ;;  %s888_s13 = smov 0   ;;  %s1007_s0 = inlined_call_operand.vmem [shape: bf16[40,128], index: 0, kind: input, shape index: {}]   ;;  %s1008_s1 = inlined_call_operand.vmem [shape: bf16[128,384], index: 1, kind: input, shape index: {}]   ;;  %s1009_s2 = inlined_call_operand.vmem [shape: f32[1,384], index: 2, kind: input, shape index: {}]   ;;  %s1010_s3 = inlined_call_operand.vmem [shape: f32[40,384], index: 3, kind: output, shape index: {}]  }
   0x1   :  { %s890_s14 = smov 0   ;;  %s892_s15 = smov 0  }
   0x2   :  { %s894_s16 = smov 0  }
   0x3 LB: > { %s28_s17 = sadd.s32 1, %s858_s15  ;;  %s691_s18 = sadd.s32 4294967295, %s862_s16   ;;  %s862_s16 = sphi %s894_s16, %s13_s16   ;;  %s858_s15 = sphi %s892_s15, %s1015_s15   ;;  %s854_s14 = sphi %s890_s14, %s1014_s14   ;;  %s850_s13 = sphi %s888_s13, %s1013_s13   ;;  %s846_s12 = sphi %s886_s12, %s1012_s12  }
   0x4   : > { %p30_p0 = scmp.ge.s32.totalorder %s28_s17, 3  ;;  %p76_p1 = scmp.ne.s32.totalorder %s850_s13, %s846_s12 }
   0x5   : > { %p77_p2 = scmp.eq.s32.totalorder %s862_s16, 0  ;;  %p134_p4 = scmp.eq.s32.totalorder %s691_s18, 2 }
   0x6   : > { %s1017_s17 = smov (%p30_p0, %s28_s17), 0  ;;  %s69_s20 = sadd.s32 1, %s850_s13 }
   0x7   : > { %p78_p3 = por %p77_p2, %p76_p1  ;;  %s65_s19 = ssub.s32 %s858_s15, %s1017_s17 }
   0x8   : > { %p67_p5 = scmp.eq.s32.totalorder %s65_s19, 0  ;;  %p921_p6 = por %p134_p4, %p76_p1 }
   0x9   : > { %p695_p7 = scmp.ge.s32.totalorder %s862_s16, 3 }
   0xa   : > { %s926_s22 = scalar_select %p67_p5, %s850_s13, %s69_s20  }
   0xb   : > { %168 = sbr.rel (%p695_p7) target bundleno = 32 (0x20), region = 20 }
  0x12   : > { %171 = sbr.rel (!%p78_p3) target bundleno = 32 (0x20), region = 24  ;;  %s173_s23 = sand.u32 (%p78_p3), 1, %s850_s13  }
  0x13   : > { %s697_s24 = sshll.u32 (%p78_p3), %s858_s15, 2  ;;  %s696_s25 = sshll.u32 (%p78_p3), %s173_s23, 6 }
  0x14   : > { %s934_s28 = scalar_lea.vmem (%p78_p3), %s1008_s1, %s697_s24  ;;  %s175_s29 = scalar_lea.vmem (%p78_p3), [#allocation3], %s696_s25 }
  0x15   : > { %v196_v0 = vld [vmem:[%s934_s28] sm:$0xf] (%p78_p3)  ;;  %v198_v1 = vld [vmem:[%s934_s28 + $0xc] sm:$0xf] (%p78_p3)  ;;  %v200_v2 = vld [vmem:[%s934_s28 + $0x18] sm:$0xf] (%p78_p3) }
  0x16   : > { %197 = vst [vmem:[%s175_s29] sm:$0xf] (%p78_p3), %v196_v0  ;;  %199 = vst [vmem:[%s175_s29 + $0x4] sm:$0xf] (%p78_p3), %v198_v1  ;;  %v202_v3 = vld [vmem:[%s934_s28 + $0x24] sm:$0xf] (%p78_p3) }
  0x17   : > { %v204_v4 = vld [vmem:[%s934_s28 + $0x30] sm:$0xf] (%p78_p3)  ;;  %201 = vst [vmem:[%s175_s29 + $0x8] sm:$0xf] (%p78_p3), %v200_v2  ;;  %203 = vst [vmem:[%s175_s29 + $0xc] sm:$0xf] (%p78_p3), %v202_v3 }
  0x18   : > { %205 = vst [vmem:[%s175_s29 + $0x10] sm:$0xf] (%p78_p3), %v204_v4  ;;  %v206_v5 = vld [vmem:[%s934_s28 + $0x3c] sm:$0xf] (%p78_p3)  ;;  %v208_v6 = vld [vmem:[%s934_s28 + $0x48] sm:$0xf] (%p78_p3) }
  0x19   : > { %v210_v7 = vld [vmem:[%s934_s28 + $0x54] sm:$0xf]  ;;  %207 = vst [vmem:[%s175_s29 + $0x14] sm:$0xf] %v206_v5  ;;  %209 = vst [vmem:[%s175_s29 + $0x18] sm:$0xf] %v208_v6 }
  0x1a   : > { %211 = vst [vmem:[%s175_s29 + $0x1c] sm:$0xf] %v210_v7  ;;  %v212_v8 = vld [vmem:[%s934_s28 + $0x60] sm:$0xf]  ;;  %v214_v9 = vld [vmem:[%s934_s28 + $0x6c] sm:$0xf] }
  0x1b   : > { %v216_v10 = vld [vmem:[%s934_s28 + $0x78] sm:$0xf]  ;;  %213 = vst [vmem:[%s175_s29 + $0x20] sm:$0xf] %v212_v8  ;;  %215 = vst [vmem:[%s175_s29 + $0x24] sm:$0xf] %v214_v9 }
  0x1c   : > { %217 = vst [vmem:[%s175_s29 + $0x28] sm:$0xf] %v216_v10  ;;  %v218_v11 = vld [vmem:[%s934_s28 + $0x84] sm:$0xf]  ;;  %v220_v12 = vld [vmem:[%s934_s28 + $0x90] sm:$0xf] }
  0x1d   : > { %v222_v13 = vld [vmem:[%s934_s28 + $0x9c] sm:$0xf]  ;;  %219 = vst [vmem:[%s175_s29 + $0x2c] sm:$0xf] %v218_v11  ;;  %221 = vst [vmem:[%s175_s29 + $0x30] sm:$0xf] %v220_v12 }
  0x1e   : > { %223 = vst [vmem:[%s175_s29 + $0x34] sm:$0xf] %v222_v13  ;;  %v224_v14 = vld [vmem:[%s934_s28 + $0xa8] sm:$0xf]  ;;  %v226_v15 = vld [vmem:[%s934_s28 + $0xb4] sm:$0xf] }
  0x1f   : > { %225 = vst [vmem:[%s175_s29 + $0x38] sm:$0xf] %v224_v14  ;;  %227 = vst [vmem:[%s175_s29 + $0x3c] sm:$0xf] %v226_v15 }
  0x20 PF: > { %p698_p8 = scmp.ge.s32.totalorder %s862_s16, 1  ;;  %p287_p9 = scmp.lt.s32.totalorder %s862_s16, 4 }
  0x22   : > { %p288_p10 = pnand %p698_p8, %p287_p9 }
  0x23   : > { %s294_s30 = sand.u32 (!%p288_p10), 1, %s846_s12   ;;  %v864_v16 = vmov (!%p288_p10), 0.0   ;;  %vm865_vm0 = vmmov (!%p288_p10), 0   ;;  %v821_v25 = vld [vmem:[%s1007_s0 + $0x8] sm:$0xff] (!%p288_p10)   ;;  %v822_v26 = vld [vmem:[%s1007_s0] sm:$0xff] (!%p288_p10)   ;;  %p337_p11 = scmp.lt.s32.totalorder (!%p288_p10), %s854_s14, 2 }
  0x24   : > { %291 = sbr.rel (%p288_p10) target bundleno = 301 (0x12d), region = 69  ;;  %754 = vmatprep.subr.bf16.mxu1 (!%p288_p10), %v864_v16  ;;  %s699_s4 = sshll.u32 (!%p288_p10), %s294_s30, 6  ;;  %726 = vmatprep.subr.bf16.mxu0 (!%p288_p10), %v864_v16  ;;  %v823_v27 = vld [vmem:[%s1007_s0 + $0x10] ss:$0 sps:$4 sm:$0xff] (!%p288_p10)  }
  0x25   : > { %746 = vmatprep.mubr.msk.bf16.mxu1 (!%p288_p10), %vm865_vm0, %v864_v16  ;;  %742 = vmatprep.mubr.msk.bf16.mxu0 (!%p288_p10), %vm865_vm0, %v864_v16  ;;  %s959_s5 = scalar_lea.vmem (!%p288_p10), [#allocation3], %s699_s4  ;;  %s770_s24 = smul.u32 (!%p288_p10), 40, %s294_s30 }
  0x26   : > { %v813_v17 = vld [vmem:[%s959_s5] sm:$0xff] (!%p288_p10)   ;;  %v814_v18 = vld [vmem:[%s959_s5 + $0x8] sm:$0xff] (!%p288_p10)   ;;  %v815_v19 = vld [vmem:[%s959_s5 + $0x10] sm:$0xff] (!%p288_p10)  }
  0x27   : > { %762 = vmatpush3.bf16.msra.mxu1 (!%p288_p10), %v813_v17  ;;  %727 = vmatpush3.bf16.msra.mxu0 (!%p288_p10), %v813_v17  ;;  %v816_v20 = vld [vmem:[%s959_s5 + $0x18] sm:$0xff] (!%p288_p10)   ;;  %v817_v21 = vld [vmem:[%s959_s5 + $0x20] sm:$0xff] (!%p288_p10)   ;;  %v818_v22 = vld [vmem:[%s959_s5 + $0x28] sm:$0xff] (!%p288_p10)   ;;  %s326_s25 = scalar_lea.vmem (!%p288_p10), [#allocation4], %s770_s24 }
  0x28   : > { %755 = vmatprep.subr.bf16.mxu1 (!%p288_p10), %v864_v16  ;;  %728 = vmatprep.subr.bf16.mxu0 (!%p288_p10), %v864_v16  ;;  %v819_v23 = vld [vmem:[%s959_s5 + $0x30] sm:$0xff] (!%p288_p10)   ;;  %v820_v24 = vld [vmem:[%s959_s5 + $0x38] sm:$0xff] (!%p288_p10)  }
  0x2b   : > { %763 = vmatpush3.bf16.msra.mxu1 %v814_v18  ;;  %729 = vmatpush3.bf16.msra.mxu0 %v814_v18  ;;  %s338_s18 = scalar_select %p337_p11, %s854_s14, 2 }
  0x2c   : > { %756 = vmatprep.subr.bf16.mxu1 %v864_v16  ;;  %730 = vmatprep.subr.bf16.mxu0 %v864_v16  ;;  %s712_s12 = sshll.u32 (%p921_p6), %s854_s14, 3 }
  0x2d   : > { %s339_s23 = scalar_lea.vmem %s1009_s2, %s338_s18  ;;  %s543_s28 = scalar_lea.vmem (%p921_p6), %s1010_s3, %s712_s12 }
  0x2e   : > { %v711_v28 = vld [vmem:[%s339_s23] ss:$0 sm:$0xff] }
  0x2f   : > { %764 = vmatpush3.bf16.msra.mxu1 %v815_v19  ;;  %731 = vmatpush3.bf16.msra.mxu0 %v815_v19 }
  0x30   : > { %757 = vmatprep.subr.bf16.mxu1 %v864_v16  ;;  %732 = vmatprep.subr.bf16.mxu0 %v864_v16 }
  0x33   : > { %765 = vmatpush3.bf16.msra.mxu1 %v816_v20  ;;  %733 = vmatpush3.bf16.msra.mxu0 %v816_v20 }
  0x34   : > { %758 = vmatprep.subr.bf16.mxu1 %v864_v16  ;;  %734 = vmatprep.subr.bf16.mxu0 %v864_v16 }
  0x37   : > { %766 = vmatpush3.bf16.msra.mxu1 %v817_v21  ;;  %735 = vmatpush3.bf16.msra.mxu0 %v817_v21 }
  0x38   : > { %759 = vmatprep.subr.bf16.mxu1 %v864_v16  ;;  %736 = vmatprep.subr.bf16.mxu0 %v864_v16 }
  0x3b   : > { %767 = vmatpush3.bf16.msra.mxu1 %v818_v22  ;;  %737 = vmatpush3.bf16.msra.mxu0 %v818_v22 }
  0x3c   : > { %760 = vmatprep.subr.bf16.mxu1 %v864_v16  ;;  %738 = vmatprep.subr.bf16.mxu0 %v864_v16 }
  0x3f   : > { %768 = vmatpush3.bf16.msra.mxu1 %v819_v23  ;;  %739 = vmatpush3.bf16.msra.mxu0 %v819_v23 }
  0x40   : > { %761 = vmatprep.subr.bf16.mxu1 %v864_v16  ;;  %740 = vmatprep.subr.bf16.mxu0 %v864_v16 }
  0x43   : > { %769 = vmatpush3.bf16.msra.mxu1 %v820_v24  ;;  %741 = vmatpush3.bf16.msra.mxu0 %v820_v24 }
  0x46   : > { %747 = vmatmul.mubr.bf16.vlgmr.msra.gmra.mrb[0].mxu1 %v821_v25  ;;  %743 = vmatmul.mubr.bf16.vlgmr.msra.gmra.mrb[0].mxu0 %v822_v26 }
  0x47   : > { %750 = vmatprep.mubr.msk.bf16.mxu1 %vm865_vm0, %v864_v16 }
  0x4e   : > { %751 = vmatmul.mubr.bf16.gmra.mrb[4].mxu1 %v823_v27 }
 0x119   : > { %v483_v29 = vpop.f32.mrb[0].mxu1  ;;  %v475_v30 = vpop.f32.mrb[0].mxu0 }
 0x11a   : > { %v524_v31 = vadd.f32 %v711_v28, %v483_v29  ;;  %v748_v32 = vpop.f32.mrb[1].mxu1  ;;  %v522_v33 = vadd.f32 %v711_v28, %v475_v30  ;;  %v744_v34 = vpop.f32.mrb[1].mxu0 }
 0x11b   : > { %v486_v35 = vpop.f32.mrb[2].mxu1  ;;  %v478_v36 = vpop.f32.mrb[2].mxu0 }
 0x11c   : > { %529 = vst [vmem:[%s326_s25 + $0x10] sm:$0xff] %v524_v31  ;;  %v525_v37 = vadd.f32 %v711_v28, %v486_v35  ;;  %527 = vst [vmem:[%s326_s25] sm:$0xff] %v522_v33  ;;  %v749_v38 = vpop.f32.mrb[3].mxu1  ;;  %v523_v39 = vadd.f32 %v711_v28, %v478_v36  ;;  %v745_v40 = vpop.f32.mrb[3].mxu0 }
 0x11e   : > { %530 = vst [vmem:[%s326_s25 + $0x18] sm:$0xff] %v525_v37  ;;  %528 = vst [vmem:[%s326_s25 + $0x8] sm:$0xff] %v523_v39  ;;  %538 = sbr.rel (!%p921_p6) target bundleno = 301 (0x12d), region = 85 }
 0x121   : > { %v491_v41 = vpop.f32.mrb[4].mxu1 }
 0x122   : > { %v526_v42 = vadd.f32 %v711_v28, %v491_v41  ;;  %v752_v43 = vpop.f32.mrb[5].mxu1 }
 0x123   : > { %v494_v44 = vpop.f32.mrb[6].mxu1  ;;  %v579_v46 = vld [vmem:[%s326_s25] sm:$0xff] (%p921_p6)  ;;  %v583_v48 = vld [vmem:[%s326_s25 + $0x10] sm:$0xff] (%p921_p6) }
 0x124   : > { %531 = vst [vmem:[%s326_s25 + $0x20] sm:$0xff] %v526_v42  ;;  %v753_v45 = vpop.f32.mrb[7].mxu1  ;;  %580 = vst [vmem:[%s543_s28] sm:$0xff] (%p921_p6), %v579_v46 }
 0x125   : > { %v581_v47 = vld [vmem:[%s326_s25 + $0x8] sm:$0xff]  ;;  %v585_v49 = vld [vmem:[%s326_s25 + $0x18] sm:$0xff]  ;;  %584 = vst [vmem:[%s543_s28 + $0x30] sm:$0xff] %v583_v48 }
 0x126   : > { %582 = vst [vmem:[%s543_s28 + $0x18] sm:$0xff] %v581_v47  ;;  %586 = vst [vmem:[%s543_s28 + $0x48] sm:$0xff] %v585_v49 }
 0x12b   : > { %v587_v50 = vld [vmem:[%s326_s25 + $0x20] sm:$0xff] }
 0x12c   : > { %588 = vst [vmem:[%s543_s28 + $0x60] sm:$0xff] %v587_v50 }
 0x12d PF: > { %s13_s16 = sadd.s32 1, %s862_s16   ;;  %s1012_s12 = smov %s850_s13 }
 0x12e   : > { %p10_p12 = scmp.ge.s32.totalorder %s13_s16, 5   ;;  %s1013_s13 = smov %s926_s22 }
 0x12f   : > { %s1014_s14 = smov %s858_s15  ;;  %s1015_s15 = smov %s1017_s17 }
 0x130   :  { %12 = sbr.rel (!%p10_p12) target bundleno = 3 (0x3), region = 160 }

// kernel: _lambda_.20
= control target key start
LH: loop header
LB: loop body
LE: loop exit
PB: predicated region body
PF: predicated region fallthrough
CT: control target
= control target key end

     0   :  { %v302_v0 = vmov 0.0   ;;  %vm303_vm0 = vmmov 0   ;;  %s398_s1 = inlined_call_operand.vmem [shape: bf16[128,128], index: 1, kind: input, shape index: {}]   ;;  %s399_s0 = inlined_call_operand.vmem [shape: bf16[40,128], index: 0, kind: input, shape index: {}]   ;;  %s400_s2 = inlined_call_operand.vmem [shape: f32[1,128], index: 2, kind: input, shape index: {}]   ;;  %s401_s3 = inlined_call_operand.vmem [shape: f32[40,128], index: 3, kind: input, shape index: {}]   ;;  %s402_s4 = inlined_call_operand.vmem [shape: f32[40,128], index: 4, kind: output, shape index: {}]  }
   0x1   :  { %273 = vmatprep.subr.bf16.mxu1 %v302_v0  ;;  %v291_v1 = vld [vmem:[%s398_s1] sm:$0xff]   ;;  %245 = vmatprep.subr.bf16.mxu0 %v302_v0  ;;  %v292_v2 = vld [vmem:[%s398_s1 + $0x8] sm:$0xff]   ;;  %v293_v3 = vld [vmem:[%s398_s1 + $0x10] sm:$0xff]  }
   0x2   :  { %265 = vmatprep.mubr.msk.bf16.mxu1 %vm303_vm0, %v302_v0  ;;  %261 = vmatprep.mubr.msk.bf16.mxu0 %vm303_vm0, %v302_v0  ;;  %v294_v4 = vld [vmem:[%s398_s1 + $0x18] sm:$0xff]   ;;  %v295_v5 = vld [vmem:[%s398_s1 + $0x20] sm:$0xff]   ;;  %v296_v6 = vld [vmem:[%s398_s1 + $0x28] sm:$0xff]  }
   0x3   :  { %281 = vmatpush3.bf16.msra.mxu1 %v291_v1  ;;  %246 = vmatpush3.bf16.msra.mxu0 %v291_v1  ;;  %v297_v7 = vld [vmem:[%s398_s1 + $0x30] sm:$0xff]   ;;  %v298_v8 = vld [vmem:[%s398_s1 + $0x38] sm:$0xff]   ;;  %v299_v9 = vld [vmem:[%s399_s0 + $0x8] sm:$0xff]  }
   0x4   :  { %274 = vmatprep.subr.bf16.mxu1 %v302_v0  ;;  %247 = vmatprep.subr.bf16.mxu0 %v302_v0  ;;  %v300_v10 = vld [vmem:[%s399_s0] sm:$0xff]   ;;  %v301_v11 = vld [vmem:[%s399_s0 + $0x10] ss:$0 sps:$4 sm:$0xff]   ;;  %v206_v22 = vld [vmem:[%s401_s3 + $0x18] sm:$0xff] }
   0x5   :  { %v233_v12 = vld [vmem:[%s400_s2] ss:$0 sm:$0xff]  ;;  %v205_v14 = vld [vmem:[%s401_s3 + $0x10] sm:$0xff]  ;;  %v204_v24 = vld [vmem:[%s401_s3 + $0x8] sm:$0xff] }
   0x6   :  { %v203_v16 = vld [vmem:[%s401_s3] sm:$0xff] }
   0x7   :  { %282 = vmatpush3.bf16.msra.mxu1 %v292_v2  ;;  %248 = vmatpush3.bf16.msra.mxu0 %v292_v2  ;;  %v207_v34 = vld [vmem:[%s401_s3 + $0x20] sm:$0xff] }
   0x8   :  { %275 = vmatprep.subr.bf16.mxu1 %v302_v0  ;;  %249 = vmatprep.subr.bf16.mxu0 %v302_v0 }
   0xb   :  { %283 = vmatpush3.bf16.msra.mxu1 %v293_v3  ;;  %250 = vmatpush3.bf16.msra.mxu0 %v293_v3 }
   0xc   :  { %276 = vmatprep.subr.bf16.mxu1 %v302_v0  ;;  %251 = vmatprep.subr.bf16.mxu0 %v302_v0 }
   0xf   :  { %284 = vmatpush3.bf16.msra.mxu1 %v294_v4  ;;  %252 = vmatpush3.bf16.msra.mxu0 %v294_v4 }
  0x10   :  { %277 = vmatprep.subr.bf16.mxu1 %v302_v0  ;;  %253 = vmatprep.subr.bf16.mxu0 %v302_v0 }
  0x13   :  { %285 = vmatpush3.bf16.msra.mxu1 %v295_v5  ;;  %254 = vmatpush3.bf16.msra.mxu0 %v295_v5 }
  0x14   :  { %278 = vmatprep.subr.bf16.mxu1 %v302_v0  ;;  %255 = vmatprep.subr.bf16.mxu0 %v302_v0 }
  0x17   :  { %286 = vmatpush3.bf16.msra.mxu1 %v296_v6  ;;  %256 = vmatpush3.bf16.msra.mxu0 %v296_v6 }
  0x18   :  { %279 = vmatprep.subr.bf16.mxu1 %v302_v0  ;;  %257 = vmatprep.subr.bf16.mxu0 %v302_v0 }
  0x1b   :  { %287 = vmatpush3.bf16.msra.mxu1 %v297_v7  ;;  %258 = vmatpush3.bf16.msra.mxu0 %v297_v7 }
  0x1c   :  { %280 = vmatprep.subr.bf16.mxu1 %v302_v0  ;;  %259 = vmatprep.subr.bf16.mxu0 %v302_v0 }
  0x1f   :  { %288 = vmatpush3.bf16.msra.mxu1 %v298_v8  ;;  %260 = vmatpush3.bf16.msra.mxu0 %v298_v8 }
  0x22   :  { %266 = vmatmul.mubr.bf16.vlgmr.msra.gmra.mrb[0].mxu1 %v299_v9  ;;  %262 = vmatmul.mubr.bf16.vlgmr.msra.gmra.mrb[0].mxu0 %v300_v10 }
  0x23   :  { %269 = vmatprep.mubr.msk.bf16.mxu1 %vm303_vm0, %v302_v0 }
  0x2a   :  { %270 = vmatmul.mubr.bf16.gmra.mrb[4].mxu1 %v301_v11 }
  0xf5   :  { %v159_v13 = vpop.f32.mrb[0].mxu1  ;;  %v151_v15 = vpop.f32.mrb[0].mxu0 }
  0xf6   :  { %v200_v17 = vadd.f32 %v233_v12, %v159_v13  ;;  %v267_v18 = vpop.f32.mrb[1].mxu1  ;;  %v198_v19 = vadd.f32 %v233_v12, %v151_v15  ;;  %v263_v20 = vpop.f32.mrb[1].mxu0 }
  0xf7   :  { %v162_v21 = vpop.f32.mrb[2].mxu1  ;;  %v154_v23 = vpop.f32.mrb[2].mxu0 }
  0xf8   :  { %v210_v25 = vadd.f32 %v205_v14, %v200_v17  ;;  %v201_v26 = vadd.f32 %v233_v12, %v162_v21  ;;  %v208_v27 = vadd.f32 %v203_v16, %v198_v19  ;;  %v268_v28 = vpop.f32.mrb[3].mxu1  ;;  %v199_v29 = vadd.f32 %v233_v12, %v154_v23  ;;  %v264_v30 = vpop.f32.mrb[3].mxu0 }
  0xfa   :  { %215 = vst [vmem:[%s402_s4 + $0x10] sm:$0xff] %v210_v25  ;;  %v211_v31 = vadd.f32 %v206_v22, %v201_v26  ;;  %213 = vst [vmem:[%s402_s4] sm:$0xff] %v208_v27  ;;  %v209_v32 = vadd.f32 %v204_v24, %v199_v29 }
  0xfc   :  { %216 = vst [vmem:[%s402_s4 + $0x18] sm:$0xff] %v211_v31  ;;  %214 = vst [vmem:[%s402_s4 + $0x8] sm:$0xff] %v209_v32 }
  0xfd   :  { %v167_v33 = vpop.f32.mrb[4].mxu1 }
  0xfe   :  { %v202_v35 = vadd.f32 %v233_v12, %v167_v33  ;;  %v271_v36 = vpop.f32.mrb[5].mxu1 }
  0xff   :  { %v170_v37 = vpop.f32.mrb[6].mxu1 }
 0x100   :  { %v212_v38 = vadd.f32 %v207_v34, %v202_v35  ;;  %v272_v39 = vpop.f32.mrb[7].mxu1 }
 0x102   :  { %217 = vst [vmem:[%s402_s4 + $0x20] sm:$0xff] %v212_v38 }

// kernel: _lambda_.19
= control target key start
LH: loop header
LB: loop body
LE: loop exit
PB: predicated region body
PF: predicated region fallthrough
CT: control target
= control target key end

     0   :  { %s644_s12 = smov 0   ;;  %s695_s0 = inlined_call_operand.vmem [shape: bf16[8,17,32], index: 0, kind: input, shape index: {}]   ;;  %s696_s1 = inlined_call_operand.vmem [shape: bf16[8,17,32], index: 1, kind: input, shape index: {}]   ;;  %s697_s2 = inlined_call_operand.vmem [shape: bf16[8,17,32], index: 2, kind: input, shape index: {}]   ;;  %s698_s3 = inlined_call_operand.vmem [shape: f32[8,17,32], index: 3, kind: output, shape index: {}]  }
   0x1 LB: > { %s518_s13 = sadd.s32 4294967295, %s618_s12   ;;  %p522_p0 = scmp.ge.s32.totalorder %s618_s12, 1  ;;  %s618_s12 = sphi %s644_s12, %s13_s12  }
   0x2   : > { %p157_p1 = scmp.lt.s32.totalorder %s618_s12, 9 }
   0x4   : > { %p158_p2 = pnand %p522_p0, %p157_p1 }
   0x5   : > { %p191_p3 = scmp.lt.s32.totalorder (!%p158_p2), %s518_s13, 7  ;;  %v620_v0 = vmov (!%p158_p2), 0.0|0.0   ;;  %vm621_vm0 = vmmov (!%p158_p2), 0   ;;  %v622_v1 = vmov (!%p158_p2), 0.0   ;;  %vm227_vm1 = vcmask (!%p158_p2), 261120  }
   0x6   : > { %161 = sbr.rel (%p158_p2) target bundleno = 629 (0x275), region = 32  ;;  %580 = vmatprep.subr.bf16.mxu0 (!%p158_p2), %v620_v0  ;;  %563 = vmatprep.mubr.msk.f32.mxu0 (!%p158_p2), %vm621_vm0, %v622_v1  ;;  %vm582_vm2 = vmpackc.low (!%p158_p2), %vm227_vm1, %vm227_vm1  ;;  %vm329_vm3 = vcmask (!%p158_p2), 138240   ;;  %vm336_vm4 = vcmask (!%p158_p2), 131072   ;;  %vm375_vm5 = vcmask (!%p158_p2), 1040384   ;;  %v623_v24 = vmov (!%p158_p2), 0  }
   0x7   : > { %v377_v25 = vsel (!%p158_p2), %vm375_vm5, 65535, %v623_v24  ;;  %vm437_vm6 = vcmask (!%p158_p2), 253952  }
   0xd   : > { %s700_s13 = smov (!%p191_p3, %s518_s13), 7 }
   0xe   : > { %s656_s14 = smul.u32 12, %s700_s13 }
   0xf   : > { %s585_s24 = smul.u32 24, %s700_s13 }
  0x10   : > { %s200_s17 = scalar_lea.vmem %s696_s1, %s656_s14  ;;  %s195_s20 = scalar_lea.vmem %s695_s0, %s656_s14 }
  0x11   : > { %v544_v2 = vld [vmem:[%s200_s17] sm:$0xff]   ;;  %v220_v3 = vld [vmem:[%s200_s17 + $0x8] sm:$0x1]  ;;  %s205_s23 = scalar_lea.vmem %s697_s2, %s656_s14  ;;  %s210_s27 = scalar_lea.vmem %s698_s3, %s585_s24 }
  0x12   : > { %583 = vmatpush3.bf16.xpose.msk.msra.mxu0 %vm582_vm2, %v544_v2  ;;  %v223_v4 = vunpack.c.l.bf16 %v220_v3  ;;  %v540_v5 = vld [vmem:[%s195_s20] sm:$0xff]   ;;  %v214_v8 = vld [vmem:[%s195_s20 + $0x8] sm:$0x1] }
  0x13   : > { %561 = vmatprep.subr.mxu0 %v622_v1  ;;  %v541_v6 = vunpack.c.l.bf16 %v540_v5  ;;  %v542_v7 = vunpack.c.h.bf16 %v540_v5  ;;  %v217_v9 = vunpack.c.l.bf16 %v214_v8  ;;  %v598_v22 = vld [vmem:[%s205_s23] sm:$0xff]   ;;  %v599_v23 = vld [vmem:[%s205_s23 + $0x8] ss:$0 sps:$4 sm:$0x11]  }
  0x14   : > { %572 = vmatprep.subr.bf16.mxu1 %v598_v22  ;;  %v379_v26 = vand.u32 %v599_v23, %v377_v25 }
  0x15   : > { %573 = vmatpush3.bf16.msra.mxu1 %v598_v22 }
  0x16   : > { %574 = vmatprep.subr.bf16.mxu1 %v379_v26 }
  0x19   : > { %575 = vmatpush3.bf16.msra.mxu1 %v379_v26 }
  0x1a   : > { %562 = vmatpush3.xpose.msk.msra.mxu0 %vm227_vm1, %v223_v4 }
  0x1d   : > { %564 = vmatmul.mubr.msk.f32.vlgmr.msra.gmra.mrb[0].mxu0 %vm227_vm1, %v541_v6 }
  0x1e   : > { %566 = vmatprep.mubr.msk.f32.mxu0 %vm621_vm0, %v622_v1 }
  0x21   : > { %567 = vmatmul.mubr.msk.f32.gmra.mrb[2].mxu0 %vm227_vm1, %v542_v7 }
  0x22   : > { %569 = vmatprep.mubr.msk.f32.mxu0 %vm621_vm0, %v622_v1 }
  0x25   : > { %570 = vmatmul.mubr.msk.f32.gmra.mrb[4].mxu0 %vm227_vm1, %v217_v9 }
  0xf0   : > { %v312_v10 = vpop.f32.mrb[0].mxu0 }
  0xf1   : > { %v326_v11 = vmul.f32 0.17677669, %v312_v10  ;;  %v565_v12 = vpop.f32.mrb[1].mxu0 }
  0xf3   : > { %v330_v13 = vsel %vm329_vm3, %v326_v11, -inf }
  0xf4   : > { %331 = vmax.xlane.f32.xlu0 %v330_v13  ;;  %v317_v14 = vpop.f32.mrb[2].mxu0 }
  0xf5   : > { %v327_v15 = vmul.f32 0.17677669, %v317_v14  ;;  %v568_v16 = vpop.f32.mrb[3].mxu0 }
  0xf7   : > { %v333_v17 = vsel %vm329_vm3, %v327_v15, -inf }
  0xf8   : > { %334 = vmax.xlane.f32.xlu0 %v333_v17  ;;  %v322_v18 = vpop.f32.mrb[4].mxu0 }
  0xf9   : > { %v328_v19 = vmul.f32 0.17677669, %v322_v18  ;;  %v571_v20 = vpop.f32.mrb[5].mxu0 }
  0xfb   : > { %v337_v21 = vsel %vm336_vm4, %v328_v19, -inf }
  0xfc   : > { %338 = vmax.xlane.f32.xlu1 %v337_v21 }
 0x181   : > { %v332_v27 = vpop.xlane.xlu0 %331 }
 0x182   : > { %v340_v28 = vsub.f32 %v326_v11, %v332_v27 }
 0x184   : > { %v343_v29 = vmul.f32 1.442695, %v340_v28 }
 0x185   : > { %v335_v30 = vpop.xlane.xlu0 %334 }
 0x186   : > { %600 = vpow2.f32 %v343_v29  ;;  %v341_v31 = vsub.f32 %v327_v15, %v335_v30 }
 0x188   : > { %v345_v32 = vmul.f32 1.442695, %v341_v31 }
 0x189   : > { %v339_v33 = vpop.xlane.xlu1 %338 }
 0x18a   : > { %602 = vpow2.f32 %v345_v32  ;;  %v342_v34 = vsub.f32 %v328_v19, %v339_v33 }
 0x18c   : > { %v347_v35 = vmul.f32 1.442695, %v342_v34 }
 0x18e   : > { %604 = vpow2.f32 %v347_v35 }
 0x190   : > { %v601_v36 = vpop.eup %600 }
 0x191   : > { %v349_v37 = vsel %vm329_vm3, %v601_v36, 0.0 }
 0x192   : > { %350 = vadd.xlane.f32.xlu1 %v349_v37 }
 0x194   : > { %v603_v38 = vpop.eup %602 }
 0x195   : > { %v352_v39 = vsel %vm329_vm3, %v603_v38, 0.0  ;;  %v358_v40 = vpack.c.bf16 %v603_v38, %v601_v36 }
 0x196   : > { %353 = vadd.xlane.f32.xlu0 %v352_v39 }
 0x197   : > { %576 = vmatprep.mubr.msk.bf16.mxu1 %vm329_vm3, %v358_v40 }
 0x198   : > { %v605_v41 = vpop.eup %604 }
 0x199   : > { %v355_v42 = vsel %vm336_vm4, %v605_v41, 0.0  ;;  %v359_v43 = vpack.c.bf16 %v605_v41, %v605_v41 }
 0x19a   : > { %356 = vadd.xlane.f32.xlu1 %v355_v42 }
 0x19b   : > { %577 = vmatmul.mubr.msk.bf16.vlgmr.msra.gmra.mrb[0].mxu1 %vm329_vm3, %v359_v43 }
 0x21f   : > { %v351_v44 = vpop.xlane.xlu1 %350 }
 0x223   : > { %v354_v46 = vpop.xlane.xlu0 %353 }
 0x227   : > { %v357_v45 = vpop.xlane.xlu1 %356 }
 0x228   : > { %606 = vrcp.f32 %v357_v45 }
 0x229   : > { %608 = vrcp.f32 %v351_v44 }
 0x22a   : > { %610 = vrcp.f32 %v354_v46 }
 0x232   : > { %v607_v47 = vpop.eup %606 }
 0x233   : > { %v609_v49 = vpop.eup %608 }
 0x234   : > { %v611_v54 = vpop.eup %610 }
 0x26e   : > { %v578_v48 = vpop.f32.mrb[0].mxu1 }
 0x26f   : > { %v434_v50 = vmul.f32 %v607_v47, %v578_v48  ;;  %v415_v51 = vpop.f32.mrb[1].mxu1 }
 0x270   : > { %v430_v52 = vmul.f32 %v609_v49, %v415_v51  ;;  %v579_v53 = vpop.f32.mrb[2].mxu1 }
 0x271   : > { %438 = vst.msk [vmem:[%s210_s27 + $0x10] sm:$0x1] %vm437_vm6, %v434_v50  ;;  %v418_v55 = vpop.f32.mrb[3].mxu1 }
 0x272   : > { %435 = vst.msk [vmem:[%s210_s27] sm:$0xff] %vm227_vm1, %v430_v52  ;;  %v432_v56 = vmul.f32 %v611_v54, %v418_v55 }
 0x274   : > { %436 = vst.msk [vmem:[%s210_s27 + $0x8] sm:$0xff] %vm227_vm1, %v432_v56 }
 0x275 PF: > { %s13_s12 = sadd.s32 1, %s618_s12  }
 0x276   : > { %p10_p4 = scmp.ge.s32.totalorder %s13_s12, 10  }
 0x278   :  { %12 = sbr.rel (!%p10_p4) target bundleno = 1 (0x1), region = 68 }

// kernel: _lambda_.22
= control target key start
LH: loop header
LB: loop body
LE: loop exit
PB: predicated region body
PF: predicated region fallthrough
CT: control target
= control target key end

     0   :  { %s1051_s12 = smov 0   ;;  %s1053_s13 = smov 0   ;;  %s1268_s0 = inlined_call_operand.vmem [shape: bf16[40,128], index: 0, kind: input, shape index: {}]   ;;  %s1269_s1 = inlined_call_operand.vmem [shape: bf16[128,512], index: 1, kind: input, shape index: {}]   ;;  %s1270_s2 = inlined_call_operand.vmem [shape: f32[1,512], index: 2, kind: input, shape index: {}]   ;;  %s1271_s3 = inlined_call_operand.vmem [shape: f32[40,512], index: 3, kind: output, shape index: {}]  }
   0x1   :  { %s1055_s14 = smov 0   ;;  %s1057_s15 = smov 0  }
   0x2   :  { %s1059_s16 = smov 0  }
   0x3 LB: > { %s28_s17 = sadd.s32 1, %s1024_s15  ;;  %s849_s18 = sadd.s32 4294967295, %s1028_s16   ;;  %s1028_s16 = sphi %s1059_s16, %s13_s16   ;;  %s1024_s15 = sphi %s1057_s15, %s1276_s15   ;;  %s1020_s14 = sphi %s1055_s14, %s1275_s14   ;;  %s1016_s13 = sphi %s1053_s13, %s1274_s13   ;;  %s1012_s12 = sphi %s1051_s12, %s1273_s12  }
   0x4   : > { %p30_p0 = scmp.ge.s32.totalorder %s28_s17, 2  ;;  %p76_p1 = scmp.ne.s32.totalorder %s1016_s13, %s1012_s12 }
   0x5   : > { %p77_p2 = scmp.eq.s32.totalorder %s1028_s16, 0  ;;  %p134_p4 = scmp.eq.s32.totalorder %s849_s18, 1 }
   0x6   : > { %s1278_s17 = smov (%p30_p0, %s28_s17), 0  ;;  %s69_s20 = sadd.s32 1, %s1016_s13 }
   0x7   : > { %p78_p3 = por %p77_p2, %p76_p1  ;;  %s65_s19 = ssub.s32 %s1024_s15, %s1278_s17 }
   0x8   : > { %p67_p5 = scmp.eq.s32.totalorder %s65_s19, 0  ;;  %p1086_p6 = por %p134_p4, %p76_p1 }
   0x9   : > { %p853_p7 = scmp.ge.s32.totalorder %s1028_s16, 2 }
   0xa   : > { %s1091_s22 = scalar_select %p67_p5, %s1016_s13, %s69_s20  }
   0xb   : > { %168 = sbr.rel (%p853_p7) target bundleno = 30 (0x1e), region = 20 }
  0x12   : > { %171 = sbr.rel (!%p78_p3) target bundleno = 30 (0x1e), region = 24  ;;  %s173_s23 = sand.u32 (%p78_p3), 1, %s1016_s13  }
  0x13   : > { %s883_s24 = sshll.u32 (%p78_p3), %s1024_s15, 3  ;;  %s854_s25 = sshll.u32 (%p78_p3), %s173_s23, 7 }
  0x14   : > { %s1099_s28 = scalar_lea.vmem (%p78_p3), %s1269_s1, %s883_s24  ;;  %s175_s29 = scalar_lea.vmem (%p78_p3), [#allocation3], %s854_s25 }
  0x15   : > { %v239_v0 = vld [vmem:[%s1099_s28] sm:$0xff] (%p78_p3)  ;;  %v241_v1 = vld [vmem:[%s1099_s28 + $0x10] sm:$0xff] (%p78_p3) }
  0x16   : > { %v243_v2 = vld [vmem:[%s1099_s28 + $0x20] sm:$0xff] (%p78_p3)  ;;  %240 = vst [vmem:[%s175_s29] sm:$0xff] (%p78_p3), %v239_v0  ;;  %242 = vst [vmem:[%s175_s29 + $0x8] sm:$0xff] (%p78_p3), %v241_v1  ;;  %v245_v3 = vld [vmem:[%s1099_s28 + $0x30] sm:$0xff] (%p78_p3) }
  0x17   : > { %244 = vst [vmem:[%s175_s29 + $0x10] sm:$0xff] (%p78_p3), %v243_v2  ;;  %v247_v4 = vld [vmem:[%s1099_s28 + $0x40] sm:$0xff] (%p78_p3)  ;;  %v249_v5 = vld [vmem:[%s1099_s28 + $0x50] sm:$0xff] (%p78_p3)  ;;  %246 = vst [vmem:[%s175_s29 + $0x18] sm:$0xff] (%p78_p3), %v245_v3 }
  0x18   : > { %248 = vst [vmem:[%s175_s29 + $0x20] sm:$0xff] (%p78_p3), %v247_v4  ;;  %250 = vst [vmem:[%s175_s29 + $0x28] sm:$0xff] (%p78_p3), %v249_v5  ;;  %v251_v6 = vld [vmem:[%s1099_s28 + $0x60] sm:$0xff] (%p78_p3)  ;;  %v253_v7 = vld [vmem:[%s1099_s28 + $0x70] sm:$0xff] (%p78_p3) }
  0x19   : > { %v255_v8 = vld [vmem:[%s1099_s28 + $0x80] sm:$0xff]  ;;  %252 = vst [vmem:[%s175_s29 + $0x30] sm:$0xff] %v251_v6  ;;  %254 = vst [vmem:[%s175_s29 + $0x38] sm:$0xff] %v253_v7  ;;  %v257_v9 = vld [vmem:[%s1099_s28 + $0x90] sm:$0xff] }
  0x1a   : > { %256 = vst [vmem:[%s175_s29 + $0x40] sm:$0xff] %v255_v8  ;;  %v259_v10 = vld [vmem:[%s1099_s28 + $0xa0] sm:$0xff]  ;;  %v261_v11 = vld [vmem:[%s1099_s28 + $0xb0] sm:$0xff]  ;;  %258 = vst [vmem:[%s175_s29 + $0x48] sm:$0xff] %v257_v9 }
  0x1b   : > { %260 = vst [vmem:[%s175_s29 + $0x50] sm:$0xff] %v259_v10  ;;  %262 = vst [vmem:[%s175_s29 + $0x58] sm:$0xff] %v261_v11  ;;  %v263_v12 = vld [vmem:[%s1099_s28 + $0xc0] sm:$0xff]  ;;  %v265_v13 = vld [vmem:[%s1099_s28 + $0xd0] sm:$0xff] }
  0x1c   : > { %v267_v14 = vld [vmem:[%s1099_s28 + $0xe0] sm:$0xff]  ;;  %264 = vst [vmem:[%s175_s29 + $0x60] sm:$0xff] %v263_v12  ;;  %266 = vst [vmem:[%s175_s29 + $0x68] sm:$0xff] %v265_v13  ;;  %v269_v15 = vld [vmem:[%s1099_s28 + $0xf0] sm:$0xff] }
  0x1d   : > { %268 = vst [vmem:[%s175_s29 + $0x70] sm:$0xff] %v267_v14  ;;  %270 = vst [vmem:[%s175_s29 + $0x78] sm:$0xff] %v269_v15 }
  0x1e PF: > { %p857_p8 = scmp.ge.s32.totalorder %s1028_s16, 1  ;;  %p283_p9 = scmp.lt.s32.totalorder %s1028_s16, 3 }
  0x20   : > { %p284_p10 = pnand %p857_p8, %p283_p9 }
  0x21   : > { %s290_s30 = sand.u32 (!%p284_p10), 1, %s1012_s12   ;;  %v1030_v16 = vmov (!%p284_p10), 0   ;;  %v967_v33 = vld [vmem:[%s1268_s0] sm:$0xff] (!%p284_p10)   ;;  %v968_v34 = vld [vmem:[%s1268_s0 + $0x8] sm:$0xff] (!%p284_p10)   ;;  %v969_v35 = vld [vmem:[%s1268_s0 + $0x10] ss:$0 sps:$4 sm:$0xff] (!%p284_p10)   ;;  %v580_v36 = vlaneseq (!%p284_p10) }
  0x22   : > { %287 = sbr.rel (%p284_p10) target bundleno = 332 (0x14c), region = 66  ;;  %s858_s4 = sshll.u32 (!%p284_p10), %s290_s30, 7  ;;  %516 = vmatprep.mubr.bf16.mxu0 (!%p284_p10), %v1030_v16  ;;  %526 = vmatprep.mubr.bf16.mxu1 (!%p284_p10), %v1030_v16 }
  0x23   : > { %s1122_s5 = scalar_lea.vmem (!%p284_p10), [#allocation3], %s858_s4  ;;  %s859_s18 = sshll.u32 (!%p284_p10), %s1020_s14, 1  ;;  %v581_v37 = vshrl.u32 (!%p284_p10), %v580_v36, 7 }
  0x24   : > { %v943_v17 = vld [vmem:[%s1122_s5 + $0x4] ss:$8 sps:$4 sm:$0xff] (!%p284_p10)   ;;  %v945_v18 = vld [vmem:[%s1122_s5] ss:$8 sps:$4 sm:$0xff] (!%p284_p10)   ;;  %v946_v19 = vld [vmem:[%s1122_s5 + $0x14] ss:$8 sps:$4 sm:$0xff] (!%p284_p10)  }
  0x25   : > { %484 = vmatprep.subr.bf16.mxu0 (!%p284_p10), %v943_v17  ;;  %885 = vmatprep.subr.bf16.mxu1 (!%p284_p10), %v943_v17  ;;  %v948_v20 = vld [vmem:[%s1122_s5 + $0x10] ss:$8 sps:$4 sm:$0xff] (!%p284_p10)   ;;  %v949_v21 = vld [vmem:[%s1122_s5 + $0x24] ss:$8 sps:$4 sm:$0xff] (!%p284_p10)   ;;  %v951_v22 = vld [vmem:[%s1122_s5 + $0x20] ss:$8 sps:$4 sm:$0xff] (!%p284_p10)  }
  0x26   : > { %485 = vmatpush1.bf16.msra.mxu0 (!%p284_p10), %v945_v18  ;;  %893 = vmatpush1.bf16.msra.mxu1 (!%p284_p10), %v945_v18  ;;  %v952_v23 = vld [vmem:[%s1122_s5 + $0x34] ss:$8 sps:$4 sm:$0xff] (!%p284_p10)   ;;  %v954_v24 = vld [vmem:[%s1122_s5 + $0x30] ss:$8 sps:$4 sm:$0xff] (!%p284_p10)   ;;  %v955_v25 = vld [vmem:[%s1122_s5 + $0x44] ss:$8 sps:$4 sm:$0xff] (!%p284_p10)  }
  0x27   : > { %486 = vmatprep.subr.bf16.mxu0 (!%p284_p10), %v946_v19  ;;  %886 = vmatprep.subr.bf16.mxu1 (!%p284_p10), %v946_v19  ;;  %v957_v26 = vld [vmem:[%s1122_s5 + $0x40] ss:$8 sps:$4 sm:$0xff] (!%p284_p10)   ;;  %v958_v27 = vld [vmem:[%s1122_s5 + $0x54] ss:$8 sps:$4 sm:$0xff] (!%p284_p10)   ;;  %v960_v28 = vld [vmem:[%s1122_s5 + $0x50] ss:$8 sps:$4 sm:$0xff] (!%p284_p10)  }
  0x28   : > { %v961_v29 = vld [vmem:[%s1122_s5 + $0x64] ss:$8 sps:$4 sm:$0xff] (!%p284_p10)   ;;  %v963_v30 = vld [vmem:[%s1122_s5 + $0x60] ss:$8 sps:$4 sm:$0xff] (!%p284_p10)   ;;  %v964_v31 = vld [vmem:[%s1122_s5 + $0x74] ss:$8 sps:$4 sm:$0xff] (!%p284_p10)  }
  0x29   : > { %v966_v32 = vld [vmem:[%s1122_s5 + $0x70] ss:$8 sps:$4 sm:$0xff]   ;;  %p336_p11 = scmp.lt.s32.totalorder %s859_s18, 3  ;;  %v582_v38 = vsub.s32 0, %v581_v37  ;;  %v586_v40 = vsub.s32 1, %v581_v37  ;;  %s901_s24 = smul.u32 80, %s290_s30 }
  0x2a   : > { %487 = vmatpush1.bf16.msra.mxu0 %v948_v20  ;;  %894 = vmatpush1.bf16.msra.mxu1 %v948_v20  ;;  %s884_s25 = sshll.u32 (%p1086_p6), %s1020_s14, 4 }
  0x2b   : > { %488 = vmatprep.subr.bf16.mxu0 %v949_v21  ;;  %887 = vmatprep.subr.bf16.mxu1 %v949_v21  ;;  %s1280_s18 = smov (!%p336_p11, %s859_s18), 3  ;;  %s1217_s12 = scalar_lea.vmem [#allocation4], %s901_s24 }
  0x2c   : > { %s338_s23 = scalar_lea.vmem %s1270_s2, %s1280_s18  ;;  %s712_s28 = scalar_lea.vmem (%p1086_p6), %s1271_s3, %s884_s25 }
  0x2d   : > { %v578_v39 = vld [vmem:[%s338_s23] sm:$0x3] }
  0x2e   : > { %489 = vmatpush1.bf16.msra.mxu0 %v951_v22  ;;  %895 = vmatpush1.bf16.msra.mxu1 %v951_v22  ;;  %v583_v41 = vrot.slane %v578_v39, %v582_v38  ;;  %v587_v42 = vrot.slane %v578_v39, %v586_v40 }
  0x2f   : > { %490 = vmatprep.subr.bf16.mxu0 %v952_v23  ;;  %888 = vmatprep.subr.bf16.mxu1 %v952_v23 }
  0x32   : > { %491 = vmatpush1.bf16.msra.mxu0 %v954_v24  ;;  %896 = vmatpush1.bf16.msra.mxu1 %v954_v24 }
  0x33   : > { %492 = vmatprep.subr.bf16.mxu0 %v955_v25  ;;  %889 = vmatprep.subr.bf16.mxu1 %v955_v25 }
  0x36   : > { %493 = vmatpush1.bf16.msra.mxu0 %v957_v26  ;;  %897 = vmatpush1.bf16.msra.mxu1 %v957_v26 }
  0x37   : > { %494 = vmatprep.subr.bf16.mxu0 %v958_v27  ;;  %890 = vmatprep.subr.bf16.mxu1 %v958_v27 }
  0x3a   : > { %495 = vmatpush1.bf16.msra.mxu0 %v960_v28  ;;  %898 = vmatpush1.bf16.msra.mxu1 %v960_v28 }
  0x3b   : > { %496 = vmatprep.subr.bf16.mxu0 %v961_v29  ;;  %891 = vmatprep.subr.bf16.mxu1 %v961_v29 }
  0x3e   : > { %497 = vmatpush1.bf16.msra.mxu0 %v963_v30  ;;  %899 = vmatpush1.bf16.msra.mxu1 %v963_v30 }
  0x3f   : > { %498 = vmatprep.subr.bf16.mxu0 %v964_v31  ;;  %892 = vmatprep.subr.bf16.mxu1 %v964_v31 }
  0x42   : > { %499 = vmatpush1.bf16.msra.mxu0 %v966_v32  ;;  %900 = vmatpush1.bf16.msra.mxu1 %v966_v32 }
  0x45   : > { %517 = vmatmul.mubr.bf16.vlgmr.msra.gmra.mrb[0].mxu0 %v967_v33  ;;  %527 = vmatmul.mubr.bf16.vlgmr.msra.gmra.mrb[0].mxu1 %v968_v34 }
  0x46   : > { %536 = vmatprep.mubr.bf16.mxu1 %v1030_v16 }
  0x4d   : > { %537 = vmatmul.mubr.bf16.gmra.mrb[4].mxu1 %v969_v35 }
 0x118   : > { %v518_v43 = vpop.f32.mrb[0].mxu0  ;;  %v528_v44 = vpop.f32.mrb[0].mxu1 }
 0x119   : > { %v1153_v45 = vadd.f32 %v583_v41, %v518_v43  ;;  %v1155_v46 = vadd.f32 %v583_v41, %v528_v44  ;;  %v520_v47 = vpop.f32.mrb[1].mxu0  ;;  %v530_v48 = vpop.f32.mrb[1].mxu1 }
 0x11a   : > { %v1157_v49 = vadd.f32 %v587_v42, %v520_v47  ;;  %v1159_v50 = vadd.f32 %v587_v42, %v530_v48  ;;  %v522_v51 = vpop.f32.mrb[2].mxu0  ;;  %v532_v52 = vpop.f32.mrb[2].mxu1 }
 0x11b   : > { %v600_v53 = vmul.f32 %v1153_v45, %v1153_v45  ;;  %v604_v54 = vmul.f32 %v1155_v46, %v1155_v46  ;;  %v1165_v55 = vadd.f32 %v583_v41, %v522_v51  ;;  %v1167_v56 = vadd.f32 %v583_v41, %v532_v52  ;;  %v524_v57 = vpop.f32.mrb[3].mxu0  ;;  %v534_v58 = vpop.f32.mrb[3].mxu1 }
 0x11c   : > { %v601_v59 = vmul.f32 %v1157_v49, %v1157_v49  ;;  %v605_v60 = vmul.f32 %v1159_v50, %v1159_v50  ;;  %v1173_v61 = vadd.f32 %v587_v42, %v524_v57  ;;  %v1175_v62 = vadd.f32 %v587_v42, %v534_v58 }
 0x11d   : > { %v610_v63 = vmul.f32 %v600_v53, %v1153_v45  ;;  %v614_v0 = vmul.f32 %v604_v54, %v1155_v46  ;;  %v602_v1 = vmul.f32 %v1165_v55, %v1165_v55  ;;  %v606_v2 = vmul.f32 %v1167_v56, %v1167_v56 }
 0x11e   : > { %v611_v3 = vmul.f32 %v601_v59, %v1157_v49  ;;  %v615_v4 = vmul.f32 %v605_v60, %v1159_v50  ;;  %v603_v5 = vmul.f32 %v1173_v61, %v1173_v61  ;;  %v607_v6 = vmul.f32 %v1175_v62, %v1175_v62 }
 0x11f   : > { %v620_v7 = vmul.f32 0.044715, %v610_v63  ;;  %v624_v8 = vmul.f32 0.044715, %v614_v0  ;;  %v612_v9 = vmul.f32 %v602_v1, %v1165_v55  ;;  %v616_v10 = vmul.f32 %v606_v2, %v1167_v56 }
 0x120   : > { %v621_v11 = vmul.f32 0.044715, %v611_v3  ;;  %v625_v12 = vmul.f32 0.044715, %v615_v4  ;;  %v613_v13 = vmul.f32 %v603_v5, %v1173_v61  ;;  %v617_v14 = vmul.f32 %v607_v6, %v1175_v62  ;;  %v538_v15 = vpop.f32.mrb[4].mxu1 }
 0x121   : > { %v630_v16 = vadd.f32 %v620_v7, %v1153_v45  ;;  %v634_v17 = vadd.f32 %v624_v8, %v1155_v46  ;;  %v622_v18 = vmul.f32 0.044715, %v612_v9  ;;  %v626_v19 = vmul.f32 0.044715, %v616_v10  ;;  %v540_v20 = vpop.f32.mrb[5].mxu1 }
 0x122   : > { %v631_v21 = vadd.f32 %v621_v11, %v1157_v49  ;;  %v635_v22 = vadd.f32 %v625_v12, %v1159_v50  ;;  %v623_v23 = vmul.f32 0.044715, %v613_v13  ;;  %v627_v24 = vmul.f32 0.044715, %v617_v14  ;;  %v542_v25 = vpop.f32.mrb[6].mxu1 }
 0x123   : > { %v640_v26 = vmul.f32 0.7978846, %v630_v16  ;;  %v644_v27 = vmul.f32 0.7978846, %v634_v17  ;;  %v632_v28 = vadd.f32 %v622_v18, %v1165_v55  ;;  %v636_v29 = vadd.f32 %v626_v19, %v1167_v56  ;;  %v543_v30 = vpop.f32.mrb[7].mxu1 }
 0x124   : > { %v641_v31 = vmul.f32 0.7978846, %v631_v21  ;;  %v645_v32 = vmul.f32 0.7978846, %v635_v22  ;;  %v633_v33 = vadd.f32 %v623_v23, %v1173_v61  ;;  %v637_v34 = vadd.f32 %v627_v24, %v1175_v62 }
 0x125   : > { %970 = vtanh.f32 %v640_v26  ;;  %v642_v35 = vmul.f32 0.7978846, %v632_v28  ;;  %v1201_v36 = vadd.f32 %v583_v41, %v538_v15  ;;  %v646_v37 = vmul.f32 0.7978846, %v636_v29 }
 0x126   : > { %972 = vtanh.f32 %v644_v27  ;;  %v1203_v38 = vadd.f32 %v587_v42, %v540_v20  ;;  %v643_v39 = vmul.f32 0.7978846, %v633_v33  ;;  %v647_v43 = vmul.f32 0.7978846, %v637_v34 }
 0x127   : > { %974 = vtanh.f32 %v641_v31  ;;  %v608_v40 = vmul.f32 %v1201_v36, %v1201_v36 }
 0x128   : > { %976 = vtanh.f32 %v645_v32  ;;  %v609_v44 = vmul.f32 %v1203_v38, %v1203_v38 }
 0x129   : > { %978 = vtanh.f32 %v642_v35  ;;  %v618_v47 = vmul.f32 %v608_v40, %v1201_v36 }
 0x12a   : > { %980 = vtanh.f32 %v646_v37  ;;  %v619_v41 = vmul.f32 %v609_v44, %v1203_v38 }
 0x12b   : > { %982 = vtanh.f32 %v643_v39  ;;  %v628_v42 = vmul.f32 0.044715, %v618_v47 }
 0x12c   : > { %984 = vtanh.f32 %v647_v43  ;;  %v629_v48 = vmul.f32 0.044715, %v619_v41 }
 0x12d   : > { %v638_v51 = vadd.f32 %v628_v42, %v1201_v36 }
 0x12e   : > { %v639_v52 = vadd.f32 %v629_v48, %v1203_v38 }
 0x12f   : > { %v971_v53 = vpop.eup %970  ;;  %v648_v54 = vmul.f32 0.7978846, %v638_v51 }
 0x130   : > { %v973_v57 = vpop.eup %972  ;;  %v660_v58 = vadd.f32 1.0, %v971_v53  ;;  %v649_v59 = vmul.f32 0.7978846, %v639_v52 }
 0x131   : > { %v975_v60 = vpop.eup %974  ;;  %v664_v63 = vadd.f32 1.0, %v973_v57  ;;  %986 = vtanh.f32 %v648_v54 }
 0x132   : > { %v977_v0 = vpop.eup %976  ;;  %v670_v1 = vmul.f32 0.5, %v660_v58  ;;  %v661_v2 = vadd.f32 1.0, %v975_v60  ;;  %988 = vtanh.f32 %v649_v59 }
 0x133   : > { %v979_v3 = vpop.eup %978  ;;  %v674_v4 = vmul.f32 0.5, %v664_v63  ;;  %v665_v5 = vadd.f32 1.0, %v977_v0 }
 0x134   : > { %v981_v6 = vpop.eup %980  ;;  %v680_v7 = vmul.f32 %v670_v1, %v1153_v45  ;;  %v671_v8 = vmul.f32 0.5, %v661_v2  ;;  %v662_v9 = vadd.f32 1.0, %v979_v3 }
 0x135   : > { %v983_v10 = vpop.eup %982  ;;  %v684_v11 = vmul.f32 %v674_v4, %v1155_v46  ;;  %v675_v12 = vmul.f32 0.5, %v665_v5  ;;  %v666_v13 = vadd.f32 1.0, %v981_v6 }
 0x136   : > { %v985_v14 = vpop.eup %984  ;;  %690 = vst [vmem:[%s1217_s12] sm:$0xff] %v680_v7  ;;  %v681_v15 = vmul.f32 %v671_v8, %v1157_v49  ;;  %v672_v45 = vmul.f32 0.5, %v662_v9  ;;  %v663_v16 = vadd.f32 1.0, %v983_v10 }
 0x137   : > { %694 = vst [vmem:[%s1217_s12 + $0x20] sm:$0xff] %v684_v11  ;;  %v685_v46 = vmul.f32 %v675_v12, %v1159_v50  ;;  %v676_v17 = vmul.f32 0.5, %v666_v13  ;;  %v667_v18 = vadd.f32 1.0, %v985_v14 }
 0x138   : > { %691 = vst [vmem:[%s1217_s12 + $0x8] sm:$0xff] %v681_v15  ;;  %v682_v19 = vmul.f32 %v672_v45, %v1165_v55  ;;  %v673_v20 = vmul.f32 0.5, %v663_v16 }
 0x139   : > { %695 = vst [vmem:[%s1217_s12 + $0x28] sm:$0xff] %v685_v46  ;;  %v686_v21 = vmul.f32 %v676_v17, %v1167_v56  ;;  %v677_v22 = vmul.f32 0.5, %v667_v18 }
 0x13a   : > { %692 = vst [vmem:[%s1217_s12 + $0x10] sm:$0xff] %v682_v19  ;;  %v683_v49 = vmul.f32 %v673_v20, %v1173_v61 }
 0x13b   : > { %v987_v23 = vpop.eup %986  ;;  %696 = vst [vmem:[%s1217_s12 + $0x30] sm:$0xff] %v686_v21  ;;  %v687_v50 = vmul.f32 %v677_v22, %v1175_v62 }
 0x13c   : > { %v989_v24 = vpop.eup %988  ;;  %693 = vst [vmem:[%s1217_s12 + $0x18] sm:$0xff] %v683_v49  ;;  %v668_v25 = vadd.f32 1.0, %v987_v23 }
 0x13d   : > { %697 = vst [vmem:[%s1217_s12 + $0x38] sm:$0xff] %v687_v50  ;;  %v669_v26 = vadd.f32 1.0, %v989_v24  ;;  %706 = sbr.rel (!%p1086_p6) target bundleno = 332 (0x14c), region = 82  ;;  %v725_v61 = vld [vmem:[%s1217_s12] sm:$0xff] (%p1086_p6) }
 0x13e   : > { %v678_v55 = vmul.f32 0.5, %v668_v25  ;;  %v733_v31 = vld [vmem:[%s1217_s12 + $0x20] sm:$0xff] (%p1086_p6)  ;;  %726 = vst [vmem:[%s712_s28] sm:$0xff] (%p1086_p6), %v725_v61 }
 0x13f   : > { %v679_v27 = vmul.f32 0.5, %v669_v26  ;;  %v727_v62 = vld [vmem:[%s1217_s12 + $0x8] sm:$0xff] (%p1086_p6)  ;;  %734 = vst [vmem:[%s712_s28 + $0x40] sm:$0xff] (%p1086_p6), %v733_v31 }
 0x140   : > { %v688_v28 = vmul.f32 %v678_v55, %v1201_v36  ;;  %v735_v32 = vld [vmem:[%s1217_s12 + $0x28] sm:$0xff] (%p1086_p6)  ;;  %728 = vst [vmem:[%s712_s28 + $0x8] sm:$0xff] (%p1086_p6), %v727_v62 }
 0x141   : > { %v689_v56 = vmul.f32 %v679_v27, %v1203_v38  ;;  %v729_v29 = vld [vmem:[%s1217_s12 + $0x10] sm:$0xff] (%p1086_p6)  ;;  %736 = vst [vmem:[%s712_s28 + $0x48] sm:$0xff] (%p1086_p6), %v735_v32 }
 0x142   : > { %698 = vst [vmem:[%s1217_s12 + $0x40] sm:$0xff] %v688_v28  ;;  %730 = vst [vmem:[%s712_s28 + $0x20] sm:$0xff] (%p1086_p6), %v729_v29  ;;  %v737_v33 = vld [vmem:[%s1217_s12 + $0x30] sm:$0xff] (%p1086_p6) }
 0x143   : > { %699 = vst [vmem:[%s1217_s12 + $0x48] sm:$0xff] %v689_v56  ;;  %v731_v30 = vld [vmem:[%s1217_s12 + $0x18] sm:$0xff] (%p1086_p6)  ;;  %738 = vst [vmem:[%s712_s28 + $0x60] sm:$0xff] (%p1086_p6), %v737_v33 }
 0x144   : > { %732 = vst [vmem:[%s712_s28 + $0x28] sm:$0xff] %v731_v30  ;;  %v739_v34 = vld [vmem:[%s1217_s12 + $0x38] sm:$0xff] }
 0x145   : > { %740 = vst [vmem:[%s712_s28 + $0x68] sm:$0xff] %v739_v34 }
 0x149   : > { %v741_v35 = vld [vmem:[%s1217_s12 + $0x40] sm:$0xff] }
 0x14a   : > { %742 = vst [vmem:[%s712_s28 + $0x80] sm:$0xff] %v741_v35  ;;  %v743_v36 = vld [vmem:[%s1217_s12 + $0x48] sm:$0xff] }
 0x14b   : > { %744 = vst [vmem:[%s712_s28 + $0x88] sm:$0xff] %v743_v36 }
 0x14c PF: > { %s13_s16 = sadd.s32 1, %s1028_s16   ;;  %s1273_s12 = smov %s1016_s13 }
 0x14d   : > { %p10_p12 = scmp.ge.s32.totalorder %s13_s16, 4   ;;  %s1274_s13 = smov %s1091_s22 }
 0x14e   : > { %s1275_s14 = smov %s1024_s15  ;;  %s1276_s15 = smov %s1278_s17 }
 0x14f   :  { %12 = sbr.rel (!%p10_p12) target bundleno = 3 (0x3), region = 142 }

// kernel: _lambda_.23
= control target key start
LH: loop header
LB: loop body
LE: loop exit
PB: predicated region body
PF: predicated region fallthrough
CT: control target
= control target key end

     0   :  { %s858_s1 = inlined_call_operand.vmem [shape: bf16[512,128], index: 1, kind: input, shape index: {}]   ;;  %s859_s0 = inlined_call_operand.vmem [shape: bf16[40,512], index: 0, kind: input, shape index: {}]   ;;  %s860_s2 = inlined_call_operand.vmem [shape: f32[1,128], index: 2, kind: input, shape index: {}]   ;;  %s861_s3 = inlined_call_operand.vmem [shape: f32[40,128], index: 3, kind: input, shape index: {}]   ;;  %s862_s4 = inlined_call_operand.vmem [shape: f32[40,128], index: 4, kind: output, shape index: {}]  }
   0x1   :  { %v626_v0 = vld [vmem:[%s858_s1 + $0x40] sm:$0xff]   ;;  %v630_v4 = vld [vmem:[%s858_s1 + $0x48] sm:$0xff]   ;;  %v634_v8 = vld [vmem:[%s858_s1 + $0x50] sm:$0xff]  }
   0x2   :  { %v627_v1 = vld [vmem:[%s858_s1 + $0xc0] sm:$0xff]   ;;  %558 = vmatprep.subr.bf16.mxu0 %v626_v0  ;;  %v631_v5 = vld [vmem:[%s858_s1 + $0xc8] sm:$0xff]   ;;  %v635_v9 = vld [vmem:[%s858_s1 + $0xd0] sm:$0xff]  }
   0x3   :  { %v628_v2 = vld [vmem:[%s858_s1] sm:$0xff]   ;;  %592 = vmatprep.subr.bf16.mxu1 %v627_v1  ;;  %v632_v6 = vld [vmem:[%s858_s1 + $0x8] sm:$0xff]   ;;  %v636_v10 = vld [vmem:[%s858_s1 + $0x10] sm:$0xff]  }
   0x4   :  { %v629_v3 = vld [vmem:[%s858_s1 + $0x80] sm:$0xff]   ;;  %559 = vmatpush3.bf16.msra.mxu0 %v628_v2  ;;  %v633_v7 = vld [vmem:[%s858_s1 + $0x88] sm:$0xff]   ;;  %v637_v11 = vld [vmem:[%s858_s1 + $0x90] sm:$0xff]  }
   0x5   :  { %593 = vmatpush3.bf16.msra.mxu1 %v629_v3  ;;  %560 = vmatprep.subr.bf16.mxu0 %v630_v4  ;;  %v638_v12 = vld [vmem:[%s858_s1 + $0x58] sm:$0xff]   ;;  %v642_v16 = vld [vmem:[%s858_s1 + $0x60] sm:$0xff]   ;;  %v646_v20 = vld [vmem:[%s858_s1 + $0x68] sm:$0xff]  }
   0x6   :  { %594 = vmatprep.subr.bf16.mxu1 %v631_v5  ;;  %v639_v13 = vld [vmem:[%s858_s1 + $0xd8] sm:$0xff]   ;;  %v643_v17 = vld [vmem:[%s858_s1 + $0xe0] sm:$0xff]   ;;  %v647_v21 = vld [vmem:[%s858_s1 + $0xe8] sm:$0xff]  }
   0x7   :  { %v640_v14 = vld [vmem:[%s858_s1 + $0x18] sm:$0xff]   ;;  %v644_v18 = vld [vmem:[%s858_s1 + $0x20] sm:$0xff]   ;;  %v648_v22 = vld [vmem:[%s858_s1 + $0x28] sm:$0xff]  }
   0x8   :  { %561 = vmatpush3.bf16.msra.mxu0 %v632_v6  ;;  %v641_v15 = vld [vmem:[%s858_s1 + $0x98] sm:$0xff]   ;;  %v645_v19 = vld [vmem:[%s858_s1 + $0xa0] sm:$0xff]   ;;  %v649_v23 = vld [vmem:[%s858_s1 + $0xa8] sm:$0xff]  }
   0x9   :  { %595 = vmatpush3.bf16.msra.mxu1 %v633_v7  ;;  %562 = vmatprep.subr.bf16.mxu0 %v634_v8  ;;  %v650_v24 = vld [vmem:[%s858_s1 + $0x70] sm:$0xff]   ;;  %v654_v28 = vld [vmem:[%s858_s1 + $0x78] sm:$0xff]   ;;  %v40_v38 = vld [vmem:[%s859_s0 + $0x40] sm:$0xff] }
   0xa   :  { %596 = vmatprep.subr.bf16.mxu1 %v635_v9  ;;  %v651_v25 = vld [vmem:[%s858_s1 + $0xf0] sm:$0xff]   ;;  %v655_v29 = vld [vmem:[%s858_s1 + $0xf8] sm:$0xff]   ;;  %v41_v39 = vld [vmem:[%s859_s0 + $0x48] sm:$0xff]  ;;  %v522_v42 = vcombine.high %v40_v38, %v40_v38  ;;  %v521_v44 = vcombine.low %v40_v38, %v40_v38 }
   0xb   :  { %v652_v26 = vld [vmem:[%s858_s1 + $0x30] sm:$0xff]   ;;  %v656_v30 = vld [vmem:[%s858_s1 + $0x38] sm:$0xff]   ;;  %v524_v43 = vcombine.high %v41_v39, %v41_v39  ;;  %v523_v45 = vcombine.low %v41_v39, %v41_v39  ;;  %v557_v55 = vld [vmem:[%s860_s2] ss:$0 sm:$0xff] }
   0xc   :  { %563 = vmatpush3.bf16.msra.mxu0 %v636_v10  ;;  %v653_v27 = vld [vmem:[%s858_s1 + $0xb0] sm:$0xff]   ;;  %v657_v31 = vld [vmem:[%s858_s1 + $0xb8] sm:$0xff]   ;;  %v494_v60 = vld [vmem:[%s861_s3] sm:$0xff] }
   0xd   :  { %597 = vmatpush3.bf16.msra.mxu1 %v637_v11  ;;  %564 = vmatprep.subr.bf16.mxu0 %v638_v12  ;;  %v658_v32 = vld [vmem:[%s859_s0] ss:$16 sps:$4 sm:$0xff]   ;;  %v660_v33 = vld [vmem:[%s859_s0 + $0x4] ss:$16 sps:$4 sm:$0xff]   ;;  %v661_v34 = vld [vmem:[%s859_s0 + $0x8] ss:$16 sps:$4 sm:$0xff]  }
   0xe   :  { %598 = vmatprep.subr.bf16.mxu1 %v639_v13  ;;  %v663_v35 = vld [vmem:[%s859_s0 + $0xc] ss:$16 sps:$4 sm:$0xff]   ;;  %384 = vmatprep.mubr.bf16.mxu0 %v660_v33  ;;  %v664_v36 = vld [vmem:[%s859_s0 + $0x24] ss:$16 sps:$4 sm:$0xff]   ;;  %v668_v40 = vld [vmem:[%s859_s0 + $0x20] ss:$16 sps:$4 sm:$0xff]  }
   0xf   :  { %440 = vmatprep.mubr.bf16.mxu1 %v663_v35  ;;  %v666_v37 = vld [vmem:[%s859_s0 + $0x2c] ss:$16 sps:$4 sm:$0xff]   ;;  %v669_v41 = vld [vmem:[%s859_s0 + $0x28] ss:$16 sps:$4 sm:$0xff]  }
  0x10   :  { %565 = vmatpush3.bf16.msra.mxu0 %v640_v14  ;;  %v495_v63 = vld [vmem:[%s861_s3 + $0x8] sm:$0xff] }
  0x11   :  { %599 = vmatpush3.bf16.msra.mxu1 %v641_v15  ;;  %566 = vmatprep.subr.bf16.mxu0 %v642_v16  ;;  %v496_v16 = vld [vmem:[%s861_s3 + $0x10] sm:$0xff] }
  0x12   :  { %600 = vmatprep.subr.bf16.mxu1 %v643_v17 }
  0x14   :  { %567 = vmatpush3.bf16.msra.mxu0 %v644_v18 }
  0x15   :  { %601 = vmatpush3.bf16.msra.mxu1 %v645_v19  ;;  %568 = vmatprep.subr.bf16.mxu0 %v646_v20  ;;  %v497_v19 = vld [vmem:[%s861_s3 + $0x18] sm:$0xff] }
  0x16   :  { %602 = vmatprep.subr.bf16.mxu1 %v647_v21 }
  0x18   :  { %569 = vmatpush3.bf16.msra.mxu0 %v648_v22 }
  0x19   :  { %603 = vmatpush3.bf16.msra.mxu1 %v649_v23  ;;  %570 = vmatprep.subr.bf16.mxu0 %v650_v24 }
  0x1a   :  { %604 = vmatprep.subr.bf16.mxu1 %v651_v25 }
  0x1c   :  { %571 = vmatpush3.bf16.msra.mxu0 %v652_v26 }
  0x1d   :  { %605 = vmatpush3.bf16.msra.mxu1 %v653_v27  ;;  %572 = vmatprep.subr.bf16.mxu0 %v654_v28 }
  0x1e   :  { %606 = vmatprep.subr.bf16.mxu1 %v655_v29 }
  0x20   :  { %573 = vmatpush3.bf16.msra.mxu0 %v656_v30 }
  0x21   :  { %607 = vmatpush3.bf16.msra.mxu1 %v657_v31 }
  0x23   :  { %385 = vmatmul.mubr.bf16.vlgmr.msra.gmra.mrb[0].mxu0 %v658_v32 }
  0x24   :  { %441 = vmatmul.mubr.bf16.vlgmr.msra.gmra.mrb[0].mxu1 %v661_v34  ;;  %392 = vmatprep.mubr.bf16.mxu0 %v664_v36  ;;  %v498_v34 = vld [vmem:[%s861_s3 + $0x20] sm:$0xff] }
  0x25   :  { %448 = vmatprep.mubr.bf16.mxu1 %v666_v37 }
  0x2b   :  { %393 = vmatmul.mubr.bf16.gmra.mrb[4].mxu0 %v668_v40 }
  0x2c   :  { %449 = vmatmul.mubr.bf16.gmra.mrb[4].mxu1 %v669_v41  ;;  %400 = vmatprep.mubr.bf16.mxu0 %v522_v42 }
  0x2d   :  { %456 = vmatprep.mubr.bf16.mxu1 %v524_v43 }
  0x33   :  { %401 = vmatmul.mubr.bf16.gmra.mrb[8].mxu0 %v521_v44 }
  0x34   :  { %457 = vmatmul.mubr.bf16.gmra.mrb[8].mxu1 %v523_v45 }
  0xf6   :  { %v574_v46 = vpop.f32.mrb[0].mxu0 }
  0xf7   :  { %v608_v47 = vpop.f32.mrb[0].mxu1  ;;  %v575_v48 = vpop.f32.mrb[1].mxu0 }
  0xf8   :  { %v576_v49 = vadd.f32 %v575_v48, %v574_v46  ;;  %v609_v50 = vpop.f32.mrb[1].mxu1  ;;  %v577_v51 = vpop.f32.mrb[2].mxu0 }
  0xf9   :  { %v610_v52 = vadd.f32 %v609_v50, %v608_v47  ;;  %v611_v53 = vpop.f32.mrb[2].mxu1  ;;  %v578_v54 = vpop.f32.mrb[3].mxu0 }
  0xfa   :  { %v579_v56 = vadd.f32 %v578_v54, %v577_v51  ;;  %v612_v57 = vpop.f32.mrb[3].mxu1 }
  0xfb   :  { %v443_v58 = vadd.f32 %v610_v52, %v576_v49  ;;  %v613_v59 = vadd.f32 %v612_v57, %v611_v53 }
  0xfd   :  { %v489_v61 = vadd.f32 %v557_v55, %v443_v58  ;;  %v446_v62 = vadd.f32 %v613_v59, %v579_v56 }
  0xfe   :  { %v580_v0 = vpop.f32.mrb[4].mxu0 }
  0xff   :  { %v499_v1 = vadd.f32 %v494_v60, %v489_v61  ;;  %v490_v2 = vadd.f32 %v557_v55, %v446_v62  ;;  %v614_v3 = vpop.f32.mrb[4].mxu1  ;;  %v581_v4 = vpop.f32.mrb[5].mxu0 }
 0x100   :  { %v582_v5 = vadd.f32 %v581_v4, %v580_v0  ;;  %v615_v6 = vpop.f32.mrb[5].mxu1  ;;  %v583_v7 = vpop.f32.mrb[6].mxu0 }
 0x101   :  { %504 = vst [vmem:[%s862_s4] sm:$0xff] %v499_v1  ;;  %v500_v8 = vadd.f32 %v495_v63, %v490_v2  ;;  %v616_v9 = vadd.f32 %v615_v6, %v614_v3  ;;  %v617_v10 = vpop.f32.mrb[6].mxu1  ;;  %v584_v11 = vpop.f32.mrb[7].mxu0 }
 0x102   :  { %v585_v12 = vadd.f32 %v584_v11, %v583_v7  ;;  %v618_v13 = vpop.f32.mrb[7].mxu1 }
 0x103   :  { %505 = vst [vmem:[%s862_s4 + $0x8] sm:$0xff] %v500_v8  ;;  %v451_v14 = vadd.f32 %v616_v9, %v582_v5  ;;  %v619_v15 = vadd.f32 %v618_v13, %v617_v10 }
 0x105   :  { %v491_v17 = vadd.f32 %v557_v55, %v451_v14  ;;  %v454_v18 = vadd.f32 %v619_v15, %v585_v12 }
 0x106   :  { %v586_v20 = vpop.f32.mrb[8].mxu0 }
 0x107   :  { %v501_v21 = vadd.f32 %v496_v16, %v491_v17  ;;  %v492_v22 = vadd.f32 %v557_v55, %v454_v18  ;;  %v620_v23 = vpop.f32.mrb[8].mxu1  ;;  %v587_v24 = vpop.f32.mrb[9].mxu0 }
 0x108   :  { %v588_v25 = vadd.f32 %v587_v24, %v586_v20  ;;  %v621_v26 = vpop.f32.mrb[9].mxu1  ;;  %v589_v27 = vpop.f32.mrb[10].mxu0 }
 0x109   :  { %506 = vst [vmem:[%s862_s4 + $0x10] sm:$0xff] %v501_v21  ;;  %v502_v28 = vadd.f32 %v497_v19, %v492_v22  ;;  %v622_v29 = vadd.f32 %v621_v26, %v620_v23  ;;  %v623_v30 = vpop.f32.mrb[10].mxu1  ;;  %v590_v31 = vpop.f32.mrb[11].mxu0 }
 0x10a   :  { %v624_v32 = vpop.f32.mrb[11].mxu1 }
 0x10b   :  { %507 = vst [vmem:[%s862_s4 + $0x18] sm:$0xff] %v502_v28  ;;  %v459_v33 = vadd.f32 %v622_v29, %v588_v25 }
 0x10d   :  { %v493_v35 = vadd.f32 %v557_v55, %v459_v33 }
 0x10f   :  { %v503_v36 = vadd.f32 %v498_v34, %v493_v35 }
 0x111   :  { %508 = vst [vmem:[%s862_s4 + $0x20] sm:$0xff] %v503_v36 }

// kernel: _lambda_.31
= control target key start
LH: loop header
LB: loop body
LE: loop exit
PB: predicated region body
PF: predicated region fallthrough
CT: control target
= control target key end

     0   :  { %8 = vsyncpa [#allocation3], 0  ;;  %s506_s0 = inlined_call_operand.vmem [shape: f32[2,16,128], index: 0, kind: input, shape index: {}]   ;;  %s507_s1 = inlined_call_operand.vmem [shape: f32[1,128], index: 1, kind: input, shape index: {}]   ;;  %s508_s2 = inlined_call_operand.vmem [shape: f32[1,128], index: 2, kind: input, shape index: {}]   ;;  %s509_s3 = inlined_call_operand.hbm [shape: f32[2,1,128], index: 3, kind: output, shape index: {}]  }
   0x1   :  { %10 = vsyncpa [#allocation3 + $0x1], 0  ;;  %s400_s12 = smov 0   ;;  %s402_s13 = smov 0  }
   0x2   :  { %s404_s14 = smov 0   ;;  %s406_s15 = smov 0  }
   0x3 LB: > { %s421_s16 = sadd.s32 4294967295, %s377_s15   ;;  %s264_s17 = sadd.s32 4294967294, %s377_s15   ;;  %s377_s15 = sphi %s406_s15, %s515_s15   ;;  %s373_s14 = sphi %s404_s14, %s514_s14   ;;  %s369_s13 = sphi %s402_s13, %s513_s13   ;;  %s365_s12 = sphi %s400_s12, %s512_s12  }
   0x4   : > { %s425_s18 = sadd.s32 1, %s377_s15   ;;  %s91_s19 = sadd.s32 1, %s373_s14 }
   0x5   : > { %s88_s20 = ssub.s32 %s377_s15, %s425_s18  ;;  %p101_p0 = scmp.ne.s32.totalorder %s373_s14, %s369_s13 }
   0x6   : > { %p89_p1 = scmp.eq.s32.totalorder %s88_s20, 0  ;;  %p102_p2 = scmp.eq.s32.totalorder %s421_s16, 1 }
   0x7   : > { %p107_p3 = scmp.ne.s32.totalorder %s369_s13, %s365_s12  ;;  %p108_p4 = scmp.eq.s32.totalorder %s264_s17, 1 }
   0x8   : > { %s436_s21 = scalar_select %p89_p1, %s373_s14, %s91_s19  }
   0x9   : > { %p438_p5 = por %p102_p2, %p101_p0  ;;  %p442_p6 = por %p108_p4, %p107_p3 }
   0xa   : > { %p267_p7 = scmp.ge.s32.totalorder %s377_s15, 1  ;;  %p140_p8 = scmp.lt.s32.totalorder %s377_s15, 3 }
   0xc   : > { %p141_p9 = pnand %p267_p7, %p140_p8 }
   0xd   : > { %p163_p10 = scmp.lt.s32.totalorder (!%p141_p9), %s421_s16, 1  ;;  %s161_s29 = sand.u32 (!%p141_p9), 1, %s369_s13   ;;  %v191_v18 = vld [vmem:[%s507_s1] sm:$0x1] (!%p141_p9) }
   0xe   : > { %144 = sbr.rel (%p141_p9) target bundleno = 367 (0x16f), region = 32  ;;  %v193_v20 = vld [vmem:[%s508_s2] sm:$0x1] (!%p141_p9)  ;;  %s270_s7 = sshll.u32 (!%p141_p9), %s421_s16, 4 }
   0xf   : > { %s162_s8 = scalar_lea.vmem (!%p141_p9), [#allocation2], %s161_s29  ;;  %s464_s17 = scalar_lea.hbm (!%p141_p9), %s509_s3, %s270_s7 }
  0x10   : > { %s209_s9 = sshll.u32 (!%p141_p9), %s162_s8, 4  ;;  %s197_s19 = scalar_lea.sflag (!%p141_p9), [#allocation3], %s161_s29  ;;  %s466_s9 = int_to_ptr.vmem [resolvable:$true] %s209_s9 }
  0x11   : > { %s315_s20 = scalar_lea.vmem (!%p141_p9), %s466_s9, 16 }
  0x12   : > { %p316_p11 = scmp.ne.s32.totalorder (!%p141_p9), %s466_s9, %s315_s20 }
  0x14   : > { %p317_p12 = pnand (!%p141_p9), %p316_p11, %p438_p5 }
  0x15   : > { %s164_s24 = scalar_select %p163_p10, %s421_s16, 1 }
  0x16   : > { %p318_p13 = pneg %p317_p12  ;;  %s379_s16 = smov [#allocation2]  }
  0x17   : > { %s273_s25 = sshll.u32 %s164_s24, 4  ;;  %s319_s24 = sshll.u32 %s379_s16, 4  ;;  %s320_s24 = int_to_ptr.vmem [resolvable:$false] %s319_s24 }
  0x18   : > { %s167_s28 = scalar_lea.vmem %s506_s0, %s273_s25  ;;  %s321_s25 = scalar_lea.vmem %s320_s24, 32 }
  0x19   : > { %v168_v0 = vld [vmem:[%s167_s28] sm:$0xff]  ;;  %v169_v1 = vld [vmem:[%s167_s28 + $0x8] sm:$0xff]  ;;  %p322_p0 = scmp.lt.s32.totalorder %s466_s9, %s320_s24  ;;  %p323_p1 = scmp.lt.s32.totalorder %s321_s25, %s315_s20 }
  0x1a   : > { %v170_v2 = vadd.f32 %v169_v1, %v168_v0 }
  0x1b   : > { %p324_p2 = por %p323_p1, %p322_p0 }
  0x1c   : > { %v171_v3 = vrot.slane %v170_v2, 4 }
  0x1d   : > { %p325_p3 = pnand %p324_p2, %p318_p13 }
  0x1e   : > { %v172_v4 = vadd.f32 %v171_v3, %v170_v2 }
  0x20   : > { %v173_v5 = vrot.slane %v172_v4, 2 }
  0x22   : > { %v174_v6 = vadd.f32 %v173_v5, %v172_v4 }
  0x24   : > { %v175_v7 = vrot.slane %v174_v6, 1 }
  0x26   : > { %v176_v8 = vadd.f32 %v175_v7, %v174_v6 }
  0x28   : > { %v178_v9 = vmul.f32 0.0625, %v176_v8 }
  0x2a   : > { %179 = vadd.xlane.f32.xlu0 %v178_v9 }
  0xb7   : > { %v180_v10 = vpop.xlane.xlu0 %179 }
  0xb8   : > { %v182_v11 = vmul.f32 0.0078125, %v180_v10 }
  0xba   : > { %v183_v12 = vsub.f32 %v178_v9, %v182_v11 }
  0xbc   : > { %v184_v13 = vmul.f32 %v183_v12, %v183_v12 }
  0xbe   : > { %185 = vadd.xlane.f32.xlu0 %v184_v13 }
 0x14b   : > { %v186_v14 = vpop.xlane.xlu0 %185 }
 0x14c   : > { %v187_v15 = vmul.f32 0.0078125, %v186_v14 }
 0x14e   : > { %v188_v16 = vadd.f32 1e-06, %v187_v15 }
 0x150   : > { %313 = vrsqrt.f32 %v188_v16 }
 0x15a   : > { %v314_v17 = vpop.eup %313 }
 0x15b   : > { %v190_v19 = vmul.f32 %v314_v17, %v183_v12 }
 0x15d   : > { %v192_v21 = vmul.f32 %v191_v18, %v190_v19 }
 0x15f   : > { %v194_v22 = vadd.f32 %v193_v20, %v192_v21 }
 0x161   : > { %195 = vst [vmem:[%s162_s8] sm:$0x1] %v194_v22 }
 0x162   : > { %328 = shalt.err (!%p325_p3)
}
 0x163   : > { %s329_s26 = scalar_lea.hbm %s464_s17, 16  ;;  %s333_s29 = scalar_lea.hbm %s509_s3, 32 }
 0x164   : > { %p330_p4 = scmp.ne.s32.totalorder %s464_s17, %s329_s26  ;;  %p334_p9 = scmp.lt.u32.totalorder %s464_s17, %s509_s3 }
 0x165   : > { %p335_p10 = scmp.lt.u32.totalorder %s333_s29, %s329_s26  ;;  %p337_p12 = scmp.lt.u32.totalorder %s329_s26, %s464_s17 }
 0x166   : > { %p331_p7 = pnand %p330_p4, %p438_p5 }
 0x167   : > { %p336_p11 = por %p335_p10, %p334_p9 }
 0x168   : > { %p332_p8 = pneg %p331_p7 }
 0x169   : > { %p338_p13 = por %p337_p12, %p336_p11 }
 0x16b   : > { %p339_p0 = pnand %p338_p13, %p332_p8 }
 0x16d   : > { %342 = shalt.err (!%p339_p0)
}
 0x16e   : > { %274 = dma.vmem_to_hbm [thread:$0]  (%p438_p5), %s466_s9, 16, %s464_s17, %s197_s19  }
 0x16f PF: > { %p280_p1 = scmp.ge.s32.totalorder %s377_s15, 2  ;;  %s221_s5 = sand.u32 1, %s365_s12  }
 0x170   : > { %s222_s6 = scalar_lea.sflag [#allocation3], %s221_s5 }
 0x171   : > { %p277_p2 = pnand %p280_p1, %p442_p6 }
 0x173   : > { %360 = dma.done.wait (!%p277_p2), %s222_s6, 16  }
 0x174   : > { %362 = vsyncadd (!%p277_p2), %s222_s6, 4294967280  ;;  %p13_p3 = scmp.ge.s32.totalorder %s425_s18, 4   ;;  %s512_s12 = smov %s369_s13 }
 0x175   : > { %s513_s13 = smov %s373_s14  ;;  %s514_s14 = smov %s436_s21 }
 0x176   : > { %s515_s15 = smov %s425_s18  ;;  %15 = sbr.rel (!%p13_p3) target bundleno = 3 (0x3), region = 67 }
 0x17d   :  { %226 = vsyncpa [#allocation3], 1 }
 0x17e   :  { %228 = vsyncpa [#allocation3 + $0x1], 1 }

</bundles_post_ra>
